<compile_context>
chip_gen: v7x
topology: tpu7x:2x2x1
jax: 0.10.0
libtpu: 0.0.40
codegen_flags: <defaults>
</compile_context>

<pallas_src>
import math

import jax
import jax.numpy as jnp
import numpy as np
from jax.experimental import pallas as pl
from jax.experimental.pallas import tpu as pltpu

# ------------------------- model hyper-parameters ------------------------- #
BATCH = 2
SEQ = 8
HIDDEN = 32
NUM_HEADS = 4
HEAD_DIM = HIDDEN // NUM_HEADS
FFN = 64
NUM_LAYERS = 2
VOCAB = 100
LN_EPS = 1e-5
BS = BATCH * SEQ
ATT_SCALE = 1.0 / math.sqrt(HEAD_DIM)

# rows of the packed per-layer vector block (each padded to 128 lanes)
_V_LN1_G, _V_LN1_B, _V_BQKV, _V_BO, _V_LN2_G, _V_LN2_B, _V_B1, _V_B2 = range(8)


# ------------------------------ fused kernel ------------------------------ #
def _layer_norm(x, g, b):
    """Row-wise LayerNorm; x [M, D], g/b [1, D]."""
    mu = jnp.mean(x, axis=-1, keepdims=True)
    var = jnp.mean(jnp.square(x - mu), axis=-1, keepdims=True)
    return (x - mu) * jax.lax.rsqrt(var + LN_EPS) * g + b


def _encoder_kernel(x_ref, bias_ref, poolw_ref,
                    wqkv_ref, wo_ref, w1_ref, w2_ref, vecs_ref,
                    flng_ref, flnb_ref,
                    out_ref):
    x = x_ref[...]                                        # [BS, D] residual stream
    bias = bias_ref[...]                                  # [BS, BS] additive attn mask

    # Static layer loop: all weights are VMEM-resident, no streaming needed.
    for l in range(NUM_LAYERS):
        vecs = vecs_ref[l]                                # [8, 128] packed vectors
        ln1_g = vecs[_V_LN1_G:_V_LN1_G + 1, :HIDDEN]
        ln1_b = vecs[_V_LN1_B:_V_LN1_B + 1, :HIDDEN]
        bqkv = vecs[_V_BQKV:_V_BQKV + 1, :3 * HIDDEN]
        bo = vecs[_V_BO:_V_BO + 1, :HIDDEN]
        ln2_g = vecs[_V_LN2_G:_V_LN2_G + 1, :HIDDEN]
        ln2_b = vecs[_V_LN2_B:_V_LN2_B + 1, :HIDDEN]
        b1 = vecs[_V_B1:_V_B1 + 1, :FFN]
        b2 = vecs[_V_B2:_V_B2 + 1, :HIDDEN]

        # ---------------- self-attention block (pre-LN) ---------------- #
        h = _layer_norm(x, ln1_g, ln1_b)
        # fused QKV projection: one MXU pass with 3*D output lanes
        qkv = jnp.dot(h, wqkv_ref[l], preferred_element_type=jnp.float32) + bqkv

        # Per-head scores cover BOTH batch rows at once ([BS,Dh] x [BS,Dh]^T
        # -> [BS,BS]); cross-batch / padded keys are killed by `bias`.
        # NOTE: at D=32 / Dh=8 the head splits are intra-vreg lane slices no
        # matter how the weight is permuted; they stay as cheap lane selects.
        heads = []
        for hh in range(NUM_HEADS):                       # static unroll (H=4)
            c0, c1 = hh * HEAD_DIM, (hh + 1) * HEAD_DIM
            q_h = qkv[:, c0:c1]
            k_h = qkv[:, HIDDEN + c0:HIDDEN + c1]
            v_h = qkv[:, 2 * HIDDEN + c0:2 * HIDDEN + c1]
            # contract last dims of both operands (no transposed k materialized)
            s = jax.lax.dot_general(
                q_h, k_h, (((1,), (1,)), ((), ())),
                preferred_element_type=jnp.float32) * ATT_SCALE
            s = s + bias
            s = s - jnp.max(s, axis=-1, keepdims=True)
            p = jnp.exp(s)
            p = p / jnp.sum(p, axis=-1, keepdims=True)    # exact divide (parity)
            heads.append(jnp.dot(p, v_h, preferred_element_type=jnp.float32))

        attn = jnp.concatenate(heads, axis=-1)            # [BS, D]
        # single output projection matmul (un-folded per-head accumulation)
        o = jnp.dot(attn, wo_ref[l], preferred_element_type=jnp.float32) + bo
        x = x + o                                         # residual add

        # ---------------- feed-forward block (pre-LN) ---------------- #
        hf = _layer_norm(x, ln2_g, ln2_b)
        ff = jnp.maximum(
            jnp.dot(hf, w1_ref[l], preferred_element_type=jnp.float32) + b1,
            0.0)                                          # [BS, FFN] stays in VMEM
        x = x + jnp.dot(ff, w2_ref[l], preferred_element_type=jnp.float32) + b2

    # -------- final LayerNorm + masked mean pooling (VPU reduction) -------- #
    xf = _layer_norm(x, flng_ref[...], flnb_ref[...])     # [BS, D]
    xw = xf * poolw_ref[...]                              # [BS, D] * [BS, 1]
    rows = [jnp.sum(xw[b * SEQ:(b + 1) * SEQ, :], axis=0, keepdims=True)
            for b in range(BATCH)]                        # static unroll (B=2)
    out_ref[...] = jnp.concatenate(rows, axis=0)          # [B, D]


def fused_sonar_encoder(x2d, attn_bias, pool_col, p):
    D, F, L = HIDDEN, FFN, NUM_LAYERS

    def fixed(shape):
        return pl.BlockSpec(shape, lambda i, _n=len(shape): (0,) * _n)

    in_specs = [
        fixed((BS, D)),             # x (frontend output)
        fixed((BS, BS)),            # combined block-diag + key-padding bias
        fixed((BS, 1)),             # normalized pooling weights per row
        fixed((L, D, 3 * D)),       # wqkv (fused Q|K|V)
        fixed((L, D, D)),           # wo
        fixed((L, D, F)),           # w1
        fixed((L, F, D)),           # w2
        fixed((L, 8, 128)),         # packed per-layer vectors
        fixed((1, D)),              # final ln gamma
        fixed((1, D)),              # final ln beta
    ]

    return pl.pallas_call(
        _encoder_kernel,
        out_shape=jax.ShapeDtypeStruct((BATCH, D), jnp.float32),
        grid=(1,),                  # single step: everything fits VMEM easily
        in_specs=in_specs,
        out_specs=pl.BlockSpec((BATCH, D), lambda i: (0, 0)),
        compiler_params=pltpu.CompilerParams(
            dimension_semantics=("arbitrary",)),
    )(x2d, attn_bias, pool_col,
      p["wqkv"], p["wo"], p["w1"], p["w2"], p["vecs"],
      p["final_ln_g"], p["final_ln_b"])


# --------------------------- params & frontend --------------------------- #
def _sinusoidal_positions(seq_len, dim):
    pos = np.arange(seq_len)[:, None].astype(np.float32)
    i = np.arange(dim // 2)[None, :].astype(np.float32)
    angle = pos / np.power(10000.0, 2.0 * i / dim)
    pe = np.zeros((seq_len, dim), dtype=np.float32)
    pe[:, 0::2] = np.sin(angle)
    pe[:, 1::2] = np.cos(angle)
    return jnp.asarray(pe)


def init_params(key):
    def nrm(k, shape, std=0.02):
        return std * jax.random.normal(k, shape, dtype=jnp.float32)

    ks = jax.random.split(key, 8)
    D, F, L = HIDDEN, FFN, NUM_LAYERS

    ln1_g = np.ones((L, D), np.float32)
    ln1_b = np.zeros((L, D), np.float32)
    ln2_g = np.ones((L, D), np.float32)
    ln2_b = np.zeros((L, D), np.float32)
    bqkv = np.asarray(nrm(ks[5], (L, 3 * D)))
    bo = np.asarray(nrm(ks[6], (L, D)))
    b1 = np.asarray(nrm(ks[7], (L, F)))
    b2 = np.zeros((L, D), np.float32)

    # Pack the 8 small per-layer vectors into one [L, 8, 128] block.
    vecs = np.zeros((L, 8, 128), np.float32)
    for row, (v, w) in enumerate([(ln1_g, D), (ln1_b, D), (bqkv, 3 * D), (bo, D),
                                  (ln2_g, D), (ln2_b, D), (b1, F), (b2, D)]):
        vecs[:, row, :w] = v

    return {
        "emb": nrm(ks[0], (VOCAB, D)),
        "pos": _sinusoidal_positions(SEQ, D),
        "wqkv": nrm(ks[1], (L, D, 3 * D)),               # Wq|Wk|Wv fused
        "wo": nrm(ks[2], (L, D, D)),
        "w1": nrm(ks[3], (L, D, F)),
        "w2": nrm(ks[4], (L, F, D)),
        "vecs": jnp.asarray(vecs),
        "final_ln_g": jnp.ones((1, D), jnp.float32),
        "final_ln_b": jnp.zeros((1, D), jnp.float32),
    }


@jax.jit
def sonar_encoder_forward(params, token_ids, seq_lens):
    """Returns sentence_embeddings [B, HIDDEN] (masked mean of encoder output)."""
    B, S = token_ids.shape
    D = HIDDEN

    # key padding mask: 1.0 where position < seq_len, else 0.0
    mask = (jnp.arange(S)[None, :] < seq_lens[:, None]).astype(jnp.float32)

    # combined block-diagonal + key-padding additive attention bias [BS, BS]
    batch_id = jnp.arange(B * S) // S
    same_batch = batch_id[:, None] == batch_id[None, :]
    key_valid = mask.reshape(B * S)[None, :] > 0.5
    attn_bias = jnp.where(same_batch & key_valid, 0.0, -1e30).astype(jnp.float32)

    # normalized mean-pooling weights per flattened row [BS, 1] (guard empty seqs)
    cnt = jnp.maximum(jnp.sum(mask, axis=-1, keepdims=True), 1.0)
    pool_col = (mask / cnt).reshape(B * S, 1)

    # frontend (glue): scaled token embedding + sinusoidal positions
    # TODO(synk): token-embedding gather stays in XLA (data-dependent gather).
    x = params["emb"][token_ids] * jnp.float32(math.sqrt(D)) + params["pos"][None, :S, :]
    x2 = x.reshape(B * S, D)

    return fused_sonar_encoder(x2, attn_bias, pool_col, params)


# ----------------------------------- main ---------------------------------- #
if __name__ == "__main__":
    key = jax.random.PRNGKey(0)
    pkey, tkey = jax.random.split(key)

    params = init_params(pkey)
    token_ids = jax.random.randint(tkey, (BATCH, SEQ), 0, VOCAB, dtype=jnp.int32)
    seq_lens = jnp.array([SEQ, 5], dtype=jnp.int32)  # second sequence is padded

    embeddings = sonar_encoder_forward(params, token_ids, seq_lens)
    embeddings = jax.block_until_ready(embeddings)

    assert embeddings.shape == (BATCH, HIDDEN)
    assert embeddings.dtype == jnp.float32
    assert bool(jnp.all(jnp.isfinite(embeddings)))
    print("KERNEL_OK")
</pallas_src>

<mosaic_0001>
module attributes {stable_mosaic.version = 11 : i64} {
  func.func @_encoder_kernel(%arg0: i32, %arg1: memref<16x32xf32, #tpu.memory_space<vmem>>, %arg2: memref<16x16xf32, #tpu.memory_space<vmem>>, %arg3: memref<16x1xf32, #tpu.memory_space<vmem>>, %arg4: memref<2x32x96xf32, #tpu.memory_space<vmem>>, %arg5: memref<2x32x32xf32, #tpu.memory_space<vmem>>, %arg6: memref<2x32x64xf32, #tpu.memory_space<vmem>>, %arg7: memref<2x64x32xf32, #tpu.memory_space<vmem>>, %arg8: memref<2x8x128xf32, #tpu.memory_space<vmem>>, %arg9: memref<1x32xf32, #tpu.memory_space<vmem>>, %arg10: memref<1x32xf32, #tpu.memory_space<vmem>>, %arg11: memref<2x32xf32, #tpu.memory_space<vmem>>) attributes {dimension_semantics = [#tpu.dimension_semantics<arbitrary>], iteration_bounds = array<i64: 1>, scalar_prefetch = 0 : i64, scratch_operands = 0 : i64, tpu.core_type = #tpu.core_type<tc>, window_params = [{pipeline_mode = #tpu.pipeline_mode<synchronous>, transform_indices = @transform_0, window_bounds = array<i64: 16, 32>}, {pipeline_mode = #tpu.pipeline_mode<synchronous>, transform_indices = @transform_1, window_bounds = array<i64: 16, 16>}, {pipeline_mode = #tpu.pipeline_mode<synchronous>, transform_indices = @transform_2, window_bounds = array<i64: 16, 1>}, {pipeline_mode = #tpu.pipeline_mode<synchronous>, transform_indices = @transform_3, window_bounds = array<i64: 2, 32, 96>}, {pipeline_mode = #tpu.pipeline_mode<synchronous>, transform_indices = @transform_4, window_bounds = array<i64: 2, 32, 32>}, {pipeline_mode = #tpu.pipeline_mode<synchronous>, transform_indices = @transform_5, window_bounds = array<i64: 2, 32, 64>}, {pipeline_mode = #tpu.pipeline_mode<synchronous>, transform_indices = @transform_6, window_bounds = array<i64: 2, 64, 32>}, {pipeline_mode = #tpu.pipeline_mode<synchronous>, transform_indices = @transform_7, window_bounds = array<i64: 2, 8, 128>}, {pipeline_mode = #tpu.pipeline_mode<synchronous>, transform_indices = @transform_8, window_bounds = array<i64: 1, 32>}, {pipeline_mode = #tpu.pipeline_mode<synchronous>, transform_indices = @transform_9, window_bounds = array<i64: 1, 32>}, {pipeline_mode = #tpu.pipeline_mode<synchronous>, transform_indices = @transform_10, window_bounds = array<i64: 2, 32>}]} {
    %c0 = arith.constant 0 : index
    %c0_0 = arith.constant 0 : index
    %0 = vector.load %arg1[%c0, %c0_0] : memref<16x32xf32, #tpu.memory_space<vmem>>, vector<16x32xf32>
    %c0_1 = arith.constant 0 : index
    %c0_2 = arith.constant 0 : index
    %1 = vector.load %arg2[%c0_1, %c0_2] : memref<16x16xf32, #tpu.memory_space<vmem>>, vector<16x16xf32>
    %c0_3 = arith.constant 0 : index
    %c0_4 = arith.constant 0 : index
    %c0_5 = arith.constant 0 : index
    %2 = vector.load %arg8[%c0_3, %c0_4, %c0_5] : memref<2x8x128xf32, #tpu.memory_space<vmem>>, vector<1x8x128xf32>
    %3 = vector.shape_cast %2 : vector<1x8x128xf32> to vector<8x128xf32>
    %4 = vector.extract_strided_slice %3 {offsets = [0, 0], sizes = [1, 32], strides = [1, 1]} : vector<8x128xf32> to vector<1x32xf32>
    %5 = vector.extract_strided_slice %3 {offsets = [1, 0], sizes = [1, 32], strides = [1, 1]} : vector<8x128xf32> to vector<1x32xf32>
    %6 = vector.extract_strided_slice %3 {offsets = [2, 0], sizes = [1, 96], strides = [1, 1]} : vector<8x128xf32> to vector<1x96xf32>
    %7 = vector.extract_strided_slice %3 {offsets = [3, 0], sizes = [1, 32], strides = [1, 1]} : vector<8x128xf32> to vector<1x32xf32>
    %8 = vector.extract_strided_slice %3 {offsets = [4, 0], sizes = [1, 32], strides = [1, 1]} : vector<8x128xf32> to vector<1x32xf32>
    %9 = vector.extract_strided_slice %3 {offsets = [5, 0], sizes = [1, 32], strides = [1, 1]} : vector<8x128xf32> to vector<1x32xf32>
    %10 = vector.extract_strided_slice %3 {offsets = [6, 0], sizes = [1, 64], strides = [1, 1]} : vector<8x128xf32> to vector<1x64xf32>
    %11 = vector.extract_strided_slice %3 {offsets = [7, 0], sizes = [1, 32], strides = [1, 1]} : vector<8x128xf32> to vector<1x32xf32>
    %cst = arith.constant dense<0.000000e+00> : vector<16xf32>
    %12 = vector.multi_reduction <add>, %0, %cst [1] : vector<16x32xf32> to vector<16xf32>
    %13 = vector.shape_cast %12 : vector<16xf32> to vector<16x1xf32>
    %cst_6 = arith.constant 3.200000e+01 : f32
    %14 = vector.broadcast %cst_6 : f32 to vector<16x1xf32>
    %15 = arith.divf %13, %14 : vector<16x1xf32>
    %16 = vector.broadcast %15 : vector<16x1xf32> to vector<16x32xf32>
    %17 = arith.subf %0, %16 : vector<16x32xf32>
    %18 = arith.mulf %17, %17 : vector<16x32xf32>
    %cst_7 = arith.constant dense<0.000000e+00> : vector<16xf32>
    %19 = vector.multi_reduction <add>, %18, %cst_7 [1] : vector<16x32xf32> to vector<16xf32>
    %20 = vector.shape_cast %19 : vector<16xf32> to vector<16x1xf32>
    %cst_8 = arith.constant 3.200000e+01 : f32
    %21 = vector.broadcast %cst_8 : f32 to vector<16x1xf32>
    %22 = arith.divf %20, %21 : vector<16x1xf32>
    %23 = vector.broadcast %15 : vector<16x1xf32> to vector<16x32xf32>
    %24 = arith.subf %0, %23 : vector<16x32xf32>
    %cst_9 = arith.constant 9.99999974E-6 : f32
    %25 = vector.broadcast %cst_9 : f32 to vector<16x1xf32>
    %26 = arith.addf %22, %25 : vector<16x1xf32>
    %27 = math.rsqrt %26 : vector<16x1xf32>
    %28 = vector.broadcast %27 : vector<16x1xf32> to vector<16x32xf32>
    %29 = arith.mulf %24, %28 : vector<16x32xf32>
    %30 = vector.broadcast %4 : vector<1x32xf32> to vector<16x32xf32>
    %31 = arith.mulf %29, %30 : vector<16x32xf32>
    %32 = vector.broadcast %5 : vector<1x32xf32> to vector<16x32xf32>
    %33 = arith.addf %31, %32 : vector<16x32xf32>
    %c0_10 = arith.constant 0 : index
    %c0_11 = arith.constant 0 : index
    %c0_12 = arith.constant 0 : index
    %34 = vector.load %arg4[%c0_10, %c0_11, %c0_12] : memref<2x32x96xf32, #tpu.memory_space<vmem>>, vector<1x32x96xf32>
    %35 = vector.shape_cast %34 : vector<1x32x96xf32> to vector<32x96xf32>
    %cst_13 = arith.constant dense<0.000000e+00> : vector<16x96xf32>
    %36 = tpu.matmul %33, %35, %cst_13 {dimension_numbers = #tpu.dot_dimension_numbers<[1], [0], [0], [1], [0, 0, 1, 1], [], []>} : vector<16x32xf32>, vector<32x96xf32>, vector<16x96xf32> -> vector<16x96xf32>
    %37 = vector.broadcast %6 : vector<1x96xf32> to vector<16x96xf32>
    %38 = arith.addf %36, %37 : vector<16x96xf32>
    %39 = vector.extract_strided_slice %38 {offsets = [0, 0], sizes = [16, 8], strides = [1, 1]} : vector<16x96xf32> to vector<16x8xf32>
    %40 = vector.extract_strided_slice %38 {offsets = [0, 32], sizes = [16, 8], strides = [1, 1]} : vector<16x96xf32> to vector<16x8xf32>
    %41 = vector.extract_strided_slice %38 {offsets = [0, 64], sizes = [16, 8], strides = [1, 1]} : vector<16x96xf32> to vector<16x8xf32>
    %cst_14 = arith.constant dense<0.000000e+00> : vector<16x16xf32>
    %42 = tpu.matmul %39, %40, %cst_14 {dimension_numbers = #tpu.dot_dimension_numbers<[1], [1], [0], [0], [0, 0, 1, 0], [], []>} : vector<16x8xf32>, vector<16x8xf32>, vector<16x16xf32> -> vector<16x16xf32>
    %cst_15 = arith.constant 0.353553385 : f32
    %43 = vector.broadcast %cst_15 : f32 to vector<16x16xf32>
    %44 = arith.mulf %42, %43 : vector<16x16xf32>
    %45 = arith.addf %44, %1 : vector<16x16xf32>
    %cst_16 = arith.constant dense<0xFF800000> : vector<16xf32>
    %46 = vector.multi_reduction <maximumf>, %45, %cst_16 [1] : vector<16x16xf32> to vector<16xf32>
    %47 = vector.shape_cast %46 : vector<16xf32> to vector<16x1xf32>
    %48 = vector.broadcast %47 : vector<16x1xf32> to vector<16x16xf32>
    %49 = arith.subf %45, %48 : vector<16x16xf32>
    %50 = math.exp %49 : vector<16x16xf32>
    %cst_17 = arith.constant dense<0.000000e+00> : vector<16xf32>
    %51 = vector.multi_reduction <add>, %50, %cst_17 [1] : vector<16x16xf32> to vector<16xf32>
    %52 = vector.shape_cast %51 : vector<16xf32> to vector<16x1xf32>
    %53 = vector.broadcast %52 : vector<16x1xf32> to vector<16x16xf32>
    %54 = arith.divf %50, %53 : vector<16x16xf32>
    %cst_18 = arith.constant dense<0.000000e+00> : vector<16x8xf32>
    %55 = tpu.matmul %54, %41, %cst_18 {dimension_numbers = #tpu.dot_dimension_numbers<[1], [0], [0], [1], [0, 0, 1, 1], [], []>} : vector<16x16xf32>, vector<16x8xf32>, vector<16x8xf32> -> vector<16x8xf32>
    %56 = vector.extract_strided_slice %38 {offsets = [0, 8], sizes = [16, 8], strides = [1, 1]} : vector<16x96xf32> to vector<16x8xf32>
    %57 = vector.extract_strided_slice %38 {offsets = [0, 40], sizes = [16, 8], strides = [1, 1]} : vector<16x96xf32> to vector<16x8xf32>
    %58 = vector.extract_strided_slice %38 {offsets = [0, 72], sizes = [16, 8], strides = [1, 1]} : vector<16x96xf32> to vector<16x8xf32>
    %cst_19 = arith.constant dense<0.000000e+00> : vector<16x16xf32>
    %59 = tpu.matmul %56, %57, %cst_19 {dimension_numbers = #tpu.dot_dimension_numbers<[1], [1], [0], [0], [0, 0, 1, 0], [], []>} : vector<16x8xf32>, vector<16x8xf32>, vector<16x16xf32> -> vector<16x16xf32>
    %cst_20 = arith.constant 0.353553385 : f32
    %60 = vector.broadcast %cst_20 : f32 to vector<16x16xf32>
    %61 = arith.mulf %59, %60 : vector<16x16xf32>
    %62 = arith.addf %61, %1 : vector<16x16xf32>
    %cst_21 = arith.constant dense<0xFF800000> : vector<16xf32>
    %63 = vector.multi_reduction <maximumf>, %62, %cst_21 [1] : vector<16x16xf32> to vector<16xf32>
    %64 = vector.shape_cast %63 : vector<16xf32> to vector<16x1xf32>
    %65 = vector.broadcast %64 : vector<16x1xf32> to vector<16x16xf32>
    %66 = arith.subf %62, %65 : vector<16x16xf32>
    %67 = math.exp %66 : vector<16x16xf32>
    %cst_22 = arith.constant dense<0.000000e+00> : vector<16xf32>
    %68 = vector.multi_reduction <add>, %67, %cst_22 [1] : vector<16x16xf32> to vector<16xf32>
    %69 = vector.shape_cast %68 : vector<16xf32> to vector<16x1xf32>
    %70 = vector.broadcast %69 : vector<16x1xf32> to vector<16x16xf32>
    %71 = arith.divf %67, %70 : vector<16x16xf32>
    %cst_23 = arith.constant dense<0.000000e+00> : vector<16x8xf32>
    %72 = tpu.matmul %71, %58, %cst_23 {dimension_numbers = #tpu.dot_dimension_numbers<[1], [0], [0], [1], [0, 0, 1, 1], [], []>} : vector<16x16xf32>, vector<16x8xf32>, vector<16x8xf32> -> vector<16x8xf32>
    %73 = vector.extract_strided_slice %38 {offsets = [0, 16], sizes = [16, 8], strides = [1, 1]} : vector<16x96xf32> to vector<16x8xf32>
    %74 = vector.extract_strided_slice %38 {offsets = [0, 48], sizes = [16, 8], strides = [1, 1]} : vector<16x96xf32> to vector<16x8xf32>
    %75 = vector.extract_strided_slice %38 {offsets = [0, 80], sizes = [16, 8], strides = [1, 1]} : vector<16x96xf32> to vector<16x8xf32>
    %cst_24 = arith.constant dense<0.000000e+00> : vector<16x16xf32>
    %76 = tpu.matmul %73, %74, %cst_24 {dimension_numbers = #tpu.dot_dimension_numbers<[1], [1], [0], [0], [0, 0, 1, 0], [], []>} : vector<16x8xf32>, vector<16x8xf32>, vector<16x16xf32> -> vector<16x16xf32>
    %cst_25 = arith.constant 0.353553385 : f32
    %77 = vector.broadcast %cst_25 : f32 to vector<16x16xf32>
    %78 = arith.mulf %76, %77 : vector<16x16xf32>
    %79 = arith.addf %78, %1 : vector<16x16xf32>
    %cst_26 = arith.constant dense<0xFF800000> : vector<16xf32>
    %80 = vector.multi_reduction <maximumf>, %79, %cst_26 [1] : vector<16x16xf32> to vector<16xf32>
    %81 = vector.shape_cast %80 : vector<16xf32> to vector<16x1xf32>
    %82 = vector.broadcast %81 : vector<16x1xf32> to vector<16x16xf32>
    %83 = arith.subf %79, %82 : vector<16x16xf32>
    %84 = math.exp %83 : vector<16x16xf32>
    %cst_27 = arith.constant dense<0.000000e+00> : vector<16xf32>
    %85 = vector.multi_reduction <add>, %84, %cst_27 [1] : vector<16x16xf32> to vector<16xf32>
    %86 = vector.shape_cast %85 : vector<16xf32> to vector<16x1xf32>
    %87 = vector.broadcast %86 : vector<16x1xf32> to vector<16x16xf32>
    %88 = arith.divf %84, %87 : vector<16x16xf32>
    %cst_28 = arith.constant dense<0.000000e+00> : vector<16x8xf32>
    %89 = tpu.matmul %88, %75, %cst_28 {dimension_numbers = #tpu.dot_dimension_numbers<[1], [0], [0], [1], [0, 0, 1, 1], [], []>} : vector<16x16xf32>, vector<16x8xf32>, vector<16x8xf32> -> vector<16x8xf32>
    %90 = vector.extract_strided_slice %38 {offsets = [0, 24], sizes = [16, 8], strides = [1, 1]} : vector<16x96xf32> to vector<16x8xf32>
    %91 = vector.extract_strided_slice %38 {offsets = [0, 56], sizes = [16, 8], strides = [1, 1]} : vector<16x96xf32> to vector<16x8xf32>
    %92 = vector.extract_strided_slice %38 {offsets = [0, 88], sizes = [16, 8], strides = [1, 1]} : vector<16x96xf32> to vector<16x8xf32>
    %cst_29 = arith.constant dense<0.000000e+00> : vector<16x16xf32>
    %93 = tpu.matmul %90, %91, %cst_29 {dimension_numbers = #tpu.dot_dimension_numbers<[1], [1], [0], [0], [0, 0, 1, 0], [], []>} : vector<16x8xf32>, vector<16x8xf32>, vector<16x16xf32> -> vector<16x16xf32>
    %cst_30 = arith.constant 0.353553385 : f32
    %94 = vector.broadcast %cst_30 : f32 to vector<16x16xf32>
    %95 = arith.mulf %93, %94 : vector<16x16xf32>
    %96 = arith.addf %95, %1 : vector<16x16xf32>
    %cst_31 = arith.constant dense<0xFF800000> : vector<16xf32>
    %97 = vector.multi_reduction <maximumf>, %96, %cst_31 [1] : vector<16x16xf32> to vector<16xf32>
    %98 = vector.shape_cast %97 : vector<16xf32> to vector<16x1xf32>
    %99 = vector.broadcast %98 : vector<16x1xf32> to vector<16x16xf32>
    %100 = arith.subf %96, %99 : vector<16x16xf32>
    %101 = math.exp %100 : vector<16x16xf32>
    %cst_32 = arith.constant dense<0.000000e+00> : vector<16xf32>
    %102 = vector.multi_reduction <add>, %101, %cst_32 [1] : vector<16x16xf32> to vector<16xf32>
    %103 = vector.shape_cast %102 : vector<16xf32> to vector<16x1xf32>
    %104 = vector.broadcast %103 : vector<16x1xf32> to vector<16x16xf32>
    %105 = arith.divf %101, %104 : vector<16x16xf32>
    %cst_33 = arith.constant dense<0.000000e+00> : vector<16x8xf32>
    %106 = tpu.matmul %105, %92, %cst_33 {dimension_numbers = #tpu.dot_dimension_numbers<[1], [0], [0], [1], [0, 0, 1, 1], [], []>} : vector<16x16xf32>, vector<16x8xf32>, vector<16x8xf32> -> vector<16x8xf32>
    %107 = tpu.concatenate %55, %72, %89, %106 in 1 : vector<16x8xf32>, vector<16x8xf32>, vector<16x8xf32>, vector<16x8xf32> -> vector<16x32xf32>
    %c0_34 = arith.constant 0 : index
    %c0_35 = arith.constant 0 : index
    %c0_36 = arith.constant 0 : index
    %108 = vector.load %arg5[%c0_34, %c0_35, %c0_36] : memref<2x32x32xf32, #tpu.memory_space<vmem>>, vector<1x32x32xf32>
    %109 = vector.shape_cast %108 : vector<1x32x32xf32> to vector<32x32xf32>
    %cst_37 = arith.constant dense<0.000000e+00> : vector<16x32xf32>
    %110 = tpu.matmul %107, %109, %cst_37 {dimension_numbers = #tpu.dot_dimension_numbers<[1], [0], [0], [1], [0, 0, 1, 1], [], []>} : vector<16x32xf32>, vector<32x32xf32>, vector<16x32xf32> -> vector<16x32xf32>
    %111 = vector.broadcast %7 : vector<1x32xf32> to vector<16x32xf32>
    %112 = arith.addf %110, %111 : vector<16x32xf32>
    %113 = arith.addf %0, %112 : vector<16x32xf32>
    %cst_38 = arith.constant dense<0.000000e+00> : vector<16xf32>
    %114 = vector.multi_reduction <add>, %113, %cst_38 [1] : vector<16x32xf32> to vector<16xf32>
    %115 = vector.shape_cast %114 : vector<16xf32> to vector<16x1xf32>
    %cst_39 = arith.constant 3.200000e+01 : f32
    %116 = vector.broadcast %cst_39 : f32 to vector<16x1xf32>
    %117 = arith.divf %115, %116 : vector<16x1xf32>
    %118 = vector.broadcast %117 : vector<16x1xf32> to vector<16x32xf32>
    %119 = arith.subf %113, %118 : vector<16x32xf32>
    %120 = arith.mulf %119, %119 : vector<16x32xf32>
    %cst_40 = arith.constant dense<0.000000e+00> : vector<16xf32>
    %121 = vector.multi_reduction <add>, %120, %cst_40 [1] : vector<16x32xf32> to vector<16xf32>
    %122 = vector.shape_cast %121 : vector<16xf32> to vector<16x1xf32>
    %cst_41 = arith.constant 3.200000e+01 : f32
    %123 = vector.broadcast %cst_41 : f32 to vector<16x1xf32>
    %124 = arith.divf %122, %123 : vector<16x1xf32>
    %125 = vector.broadcast %117 : vector<16x1xf32> to vector<16x32xf32>
    %126 = arith.subf %113, %125 : vector<16x32xf32>
    %cst_42 = arith.constant 9.99999974E-6 : f32
    %127 = vector.broadcast %cst_42 : f32 to vector<16x1xf32>
    %128 = arith.addf %124, %127 : vector<16x1xf32>
    %129 = math.rsqrt %128 : vector<16x1xf32>
    %130 = vector.broadcast %129 : vector<16x1xf32> to vector<16x32xf32>
    %131 = arith.mulf %126, %130 : vector<16x32xf32>
    %132 = vector.broadcast %8 : vector<1x32xf32> to vector<16x32xf32>
    %133 = arith.mulf %131, %132 : vector<16x32xf32>
    %134 = vector.broadcast %9 : vector<1x32xf32> to vector<16x32xf32>
    %135 = arith.addf %133, %134 : vector<16x32xf32>
    %c0_43 = arith.constant 0 : index
    %c0_44 = arith.constant 0 : index
    %c0_45 = arith.constant 0 : index
    %136 = vector.load %arg6[%c0_43, %c0_44, %c0_45] : memref<2x32x64xf32, #tpu.memory_space<vmem>>, vector<1x32x64xf32>
    %137 = vector.shape_cast %136 : vector<1x32x64xf32> to vector<32x64xf32>
    %cst_46 = arith.constant dense<0.000000e+00> : vector<16x64xf32>
    %138 = tpu.matmul %135, %137, %cst_46 {dimension_numbers = #tpu.dot_dimension_numbers<[1], [0], [0], [1], [0, 0, 1, 1], [], []>} : vector<16x32xf32>, vector<32x64xf32>, vector<16x64xf32> -> vector<16x64xf32>
    %139 = vector.broadcast %10 : vector<1x64xf32> to vector<16x64xf32>
    %140 = arith.addf %138, %139 : vector<16x64xf32>
    %cst_47 = arith.constant 0.000000e+00 : f32
    %141 = vector.broadcast %cst_47 : f32 to vector<16x64xf32>
    %142 = arith.maximumf %140, %141 : vector<16x64xf32>
    %c0_48 = arith.constant 0 : index
    %c0_49 = arith.constant 0 : index
    %c0_50 = arith.constant 0 : index
    %143 = vector.load %arg7[%c0_48, %c0_49, %c0_50] : memref<2x64x32xf32, #tpu.memory_space<vmem>>, vector<1x64x32xf32>
    %144 = vector.shape_cast %143 : vector<1x64x32xf32> to vector<64x32xf32>
    %cst_51 = arith.constant dense<0.000000e+00> : vector<16x32xf32>
    %145 = tpu.matmul %142, %144, %cst_51 {dimension_numbers = #tpu.dot_dimension_numbers<[1], [0], [0], [1], [0, 0, 1, 1], [], []>} : vector<16x64xf32>, vector<64x32xf32>, vector<16x32xf32> -> vector<16x32xf32>
    %146 = arith.addf %113, %145 : vector<16x32xf32>
    %147 = vector.broadcast %11 : vector<1x32xf32> to vector<16x32xf32>
    %148 = arith.addf %146, %147 : vector<16x32xf32>
    %c1 = arith.constant 1 : index
    %c0_52 = arith.constant 0 : index
    %c0_53 = arith.constant 0 : index
    %149 = vector.load %arg8[%c1, %c0_52, %c0_53] : memref<2x8x128xf32, #tpu.memory_space<vmem>>, vector<1x8x128xf32>
    %150 = vector.shape_cast %149 : vector<1x8x128xf32> to vector<8x128xf32>
    %151 = vector.extract_strided_slice %150 {offsets = [0, 0], sizes = [1, 32], strides = [1, 1]} : vector<8x128xf32> to vector<1x32xf32>
    %152 = vector.extract_strided_slice %150 {offsets = [1, 0], sizes = [1, 32], strides = [1, 1]} : vector<8x128xf32> to vector<1x32xf32>
    %153 = vector.extract_strided_slice %150 {offsets = [2, 0], sizes = [1, 96], strides = [1, 1]} : vector<8x128xf32> to vector<1x96xf32>
    %154 = vector.extract_strided_slice %150 {offsets = [3, 0], sizes = [1, 32], strides = [1, 1]} : vector<8x128xf32> to vector<1x32xf32>
    %155 = vector.extract_strided_slice %150 {offsets = [4, 0], sizes = [1, 32], strides = [1, 1]} : vector<8x128xf32> to vector<1x32xf32>
    %156 = vector.extract_strided_slice %150 {offsets = [5, 0], sizes = [1, 32], strides = [1, 1]} : vector<8x128xf32> to vector<1x32xf32>
    %157 = vector.extract_strided_slice %150 {offsets = [6, 0], sizes = [1, 64], strides = [1, 1]} : vector<8x128xf32> to vector<1x64xf32>
    %158 = vector.extract_strided_slice %150 {offsets = [7, 0], sizes = [1, 32], strides = [1, 1]} : vector<8x128xf32> to vector<1x32xf32>
    %cst_54 = arith.constant dense<0.000000e+00> : vector<16xf32>
    %159 = vector.multi_reduction <add>, %148, %cst_54 [1] : vector<16x32xf32> to vector<16xf32>
    %160 = vector.shape_cast %159 : vector<16xf32> to vector<16x1xf32>
    %cst_55 = arith.constant 3.200000e+01 : f32
    %161 = vector.broadcast %cst_55 : f32 to vector<16x1xf32>
    %162 = arith.divf %160, %161 : vector<16x1xf32>
    %163 = vector.broadcast %162 : vector<16x1xf32> to vector<16x32xf32>
    %164 = arith.subf %148, %163 : vector<16x32xf32>
    %165 = arith.mulf %164, %164 : vector<16x32xf32>
    %cst_56 = arith.constant dense<0.000000e+00> : vector<16xf32>
    %166 = vector.multi_reduction <add>, %165, %cst_56 [1] : vector<16x32xf32> to vector<16xf32>
    %167 = vector.shape_cast %166 : vector<16xf32> to vector<16x1xf32>
    %cst_57 = arith.constant 3.200000e+01 : f32
    %168 = vector.broadcast %cst_57 : f32 to vector<16x1xf32>
    %169 = arith.divf %167, %168 : vector<16x1xf32>
    %170 = vector.broadcast %162 : vector<16x1xf32> to vector<16x32xf32>
    %171 = arith.subf %148, %170 : vector<16x32xf32>
    %cst_58 = arith.constant 9.99999974E-6 : f32
    %172 = vector.broadcast %cst_58 : f32 to vector<16x1xf32>
    %173 = arith.addf %169, %172 : vector<16x1xf32>
    %174 = math.rsqrt %173 : vector<16x1xf32>
    %175 = vector.broadcast %174 : vector<16x1xf32> to vector<16x32xf32>
    %176 = arith.mulf %171, %175 : vector<16x32xf32>
    %177 = vector.broadcast %151 : vector<1x32xf32> to vector<16x32xf32>
    %178 = arith.mulf %176, %177 : vector<16x32xf32>
    %179 = vector.broadcast %152 : vector<1x32xf32> to vector<16x32xf32>
    %180 = arith.addf %178, %179 : vector<16x32xf32>
    %c1_59 = arith.constant 1 : index
    %c0_60 = arith.constant 0 : index
    %c0_61 = arith.constant 0 : index
    %181 = vector.load %arg4[%c1_59, %c0_60, %c0_61] : memref<2x32x96xf32, #tpu.memory_space<vmem>>, vector<1x32x96xf32>
    %182 = vector.shape_cast %181 : vector<1x32x96xf32> to vector<32x96xf32>
    %cst_62 = arith.constant dense<0.000000e+00> : vector<16x96xf32>
    %183 = tpu.matmul %180, %182, %cst_62 {dimension_numbers = #tpu.dot_dimension_numbers<[1], [0], [0], [1], [0, 0, 1, 1], [], []>} : vector<16x32xf32>, vector<32x96xf32>, vector<16x96xf32> -> vector<16x96xf32>
    %184 = vector.broadcast %153 : vector<1x96xf32> to vector<16x96xf32>
    %185 = arith.addf %183, %184 : vector<16x96xf32>
    %186 = vector.extract_strided_slice %185 {offsets = [0, 0], sizes = [16, 8], strides = [1, 1]} : vector<16x96xf32> to vector<16x8xf32>
    %187 = vector.extract_strided_slice %185 {offsets = [0, 32], sizes = [16, 8], strides = [1, 1]} : vector<16x96xf32> to vector<16x8xf32>
    %188 = vector.extract_strided_slice %185 {offsets = [0, 64], sizes = [16, 8], strides = [1, 1]} : vector<16x96xf32> to vector<16x8xf32>
    %cst_63 = arith.constant dense<0.000000e+00> : vector<16x16xf32>
    %189 = tpu.matmul %186, %187, %cst_63 {dimension_numbers = #tpu.dot_dimension_numbers<[1], [1], [0], [0], [0, 0, 1, 0], [], []>} : vector<16x8xf32>, vector<16x8xf32>, vector<16x16xf32> -> vector<16x16xf32>
    %cst_64 = arith.constant 0.353553385 : f32
    %190 = vector.broadcast %cst_64 : f32 to vector<16x16xf32>
    %191 = arith.mulf %189, %190 : vector<16x16xf32>
    %192 = arith.addf %191, %1 : vector<16x16xf32>
    %cst_65 = arith.constant dense<0xFF800000> : vector<16xf32>
    %193 = vector.multi_reduction <maximumf>, %192, %cst_65 [1] : vector<16x16xf32> to vector<16xf32>
    %194 = vector.shape_cast %193 : vector<16xf32> to vector<16x1xf32>
    %195 = vector.broadcast %194 : vector<16x1xf32> to vector<16x16xf32>
    %196 = arith.subf %192, %195 : vector<16x16xf32>
    %197 = math.exp %196 : vector<16x16xf32>
    %cst_66 = arith.constant dense<0.000000e+00> : vector<16xf32>
    %198 = vector.multi_reduction <add>, %197, %cst_66 [1] : vector<16x16xf32> to vector<16xf32>
    %199 = vector.shape_cast %198 : vector<16xf32> to vector<16x1xf32>
    %200 = vector.broadcast %199 : vector<16x1xf32> to vector<16x16xf32>
    %201 = arith.divf %197, %200 : vector<16x16xf32>
    %cst_67 = arith.constant dense<0.000000e+00> : vector<16x8xf32>
    %202 = tpu.matmul %201, %188, %cst_67 {dimension_numbers = #tpu.dot_dimension_numbers<[1], [0], [0], [1], [0, 0, 1, 1], [], []>} : vector<16x16xf32>, vector<16x8xf32>, vector<16x8xf32> -> vector<16x8xf32>
    %203 = vector.extract_strided_slice %185 {offsets = [0, 8], sizes = [16, 8], strides = [1, 1]} : vector<16x96xf32> to vector<16x8xf32>
    %204 = vector.extract_strided_slice %185 {offsets = [0, 40], sizes = [16, 8], strides = [1, 1]} : vector<16x96xf32> to vector<16x8xf32>
    %205 = vector.extract_strided_slice %185 {offsets = [0, 72], sizes = [16, 8], strides = [1, 1]} : vector<16x96xf32> to vector<16x8xf32>
    %cst_68 = arith.constant dense<0.000000e+00> : vector<16x16xf32>
    %206 = tpu.matmul %203, %204, %cst_68 {dimension_numbers = #tpu.dot_dimension_numbers<[1], [1], [0], [0], [0, 0, 1, 0], [], []>} : vector<16x8xf32>, vector<16x8xf32>, vector<16x16xf32> -> vector<16x16xf32>
    %cst_69 = arith.constant 0.353553385 : f32
    %207 = vector.broadcast %cst_69 : f32 to vector<16x16xf32>
    %208 = arith.mulf %206, %207 : vector<16x16xf32>
    %209 = arith.addf %208, %1 : vector<16x16xf32>
    %cst_70 = arith.constant dense<0xFF800000> : vector<16xf32>
    %210 = vector.multi_reduction <maximumf>, %209, %cst_70 [1] : vector<16x16xf32> to vector<16xf32>
    %211 = vector.shape_cast %210 : vector<16xf32> to vector<16x1xf32>
    %212 = vector.broadcast %211 : vector<16x1xf32> to vector<16x16xf32>
    %213 = arith.subf %209, %212 : vector<16x16xf32>
    %214 = math.exp %213 : vector<16x16xf32>
    %cst_71 = arith.constant dense<0.000000e+00> : vector<16xf32>
    %215 = vector.multi_reduction <add>, %214, %cst_71 [1] : vector<16x16xf32> to vector<16xf32>
    %216 = vector.shape_cast %215 : vector<16xf32> to vector<16x1xf32>
    %217 = vector.broadcast %216 : vector<16x1xf32> to vector<16x16xf32>
    %218 = arith.divf %214, %217 : vector<16x16xf32>
    %cst_72 = arith.constant dense<0.000000e+00> : vector<16x8xf32>
    %219 = tpu.matmul %218, %205, %cst_72 {dimension_numbers = #tpu.dot_dimension_numbers<[1], [0], [0], [1], [0, 0, 1, 1], [], []>} : vector<16x16xf32>, vector<16x8xf32>, vector<16x8xf32> -> vector<16x8xf32>
    %220 = vector.extract_strided_slice %185 {offsets = [0, 16], sizes = [16, 8], strides = [1, 1]} : vector<16x96xf32> to vector<16x8xf32>
    %221 = vector.extract_strided_slice %185 {offsets = [0, 48], sizes = [16, 8], strides = [1, 1]} : vector<16x96xf32> to vector<16x8xf32>
    %222 = vector.extract_strided_slice %185 {offsets = [0, 80], sizes = [16, 8], strides = [1, 1]} : vector<16x96xf32> to vector<16x8xf32>
    %cst_73 = arith.constant dense<0.000000e+00> : vector<16x16xf32>
    %223 = tpu.matmul %220, %221, %cst_73 {dimension_numbers = #tpu.dot_dimension_numbers<[1], [1], [0], [0], [0, 0, 1, 0], [], []>} : vector<16x8xf32>, vector<16x8xf32>, vector<16x16xf32> -> vector<16x16xf32>
    %cst_74 = arith.constant 0.353553385 : f32
    %224 = vector.broadcast %cst_74 : f32 to vector<16x16xf32>
    %225 = arith.mulf %223, %224 : vector<16x16xf32>
    %226 = arith.addf %225, %1 : vector<16x16xf32>
    %cst_75 = arith.constant dense<0xFF800000> : vector<16xf32>
    %227 = vector.multi_reduction <maximumf>, %226, %cst_75 [1] : vector<16x16xf32> to vector<16xf32>
    %228 = vector.shape_cast %227 : vector<16xf32> to vector<16x1xf32>
    %229 = vector.broadcast %228 : vector<16x1xf32> to vector<16x16xf32>
    %230 = arith.subf %226, %229 : vector<16x16xf32>
    %231 = math.exp %230 : vector<16x16xf32>
    %cst_76 = arith.constant dense<0.000000e+00> : vector<16xf32>
    %232 = vector.multi_reduction <add>, %231, %cst_76 [1] : vector<16x16xf32> to vector<16xf32>
    %233 = vector.shape_cast %232 : vector<16xf32> to vector<16x1xf32>
    %234 = vector.broadcast %233 : vector<16x1xf32> to vector<16x16xf32>
    %235 = arith.divf %231, %234 : vector<16x16xf32>
    %cst_77 = arith.constant dense<0.000000e+00> : vector<16x8xf32>
    %236 = tpu.matmul %235, %222, %cst_77 {dimension_numbers = #tpu.dot_dimension_numbers<[1], [0], [0], [1], [0, 0, 1, 1], [], []>} : vector<16x16xf32>, vector<16x8xf32>, vector<16x8xf32> -> vector<16x8xf32>
    %237 = vector.extract_strided_slice %185 {offsets = [0, 24], sizes = [16, 8], strides = [1, 1]} : vector<16x96xf32> to vector<16x8xf32>
    %238 = vector.extract_strided_slice %185 {offsets = [0, 56], sizes = [16, 8], strides = [1, 1]} : vector<16x96xf32> to vector<16x8xf32>
    %239 = vector.extract_strided_slice %185 {offsets = [0, 88], sizes = [16, 8], strides = [1, 1]} : vector<16x96xf32> to vector<16x8xf32>
    %cst_78 = arith.constant dense<0.000000e+00> : vector<16x16xf32>
    %240 = tpu.matmul %237, %238, %cst_78 {dimension_numbers = #tpu.dot_dimension_numbers<[1], [1], [0], [0], [0, 0, 1, 0], [], []>} : vector<16x8xf32>, vector<16x8xf32>, vector<16x16xf32> -> vector<16x16xf32>
    %cst_79 = arith.constant 0.353553385 : f32
    %241 = vector.broadcast %cst_79 : f32 to vector<16x16xf32>
    %242 = arith.mulf %240, %241 : vector<16x16xf32>
    %243 = arith.addf %242, %1 : vector<16x16xf32>
    %cst_80 = arith.constant dense<0xFF800000> : vector<16xf32>
    %244 = vector.multi_reduction <maximumf>, %243, %cst_80 [1] : vector<16x16xf32> to vector<16xf32>
    %245 = vector.shape_cast %244 : vector<16xf32> to vector<16x1xf32>
    %246 = vector.broadcast %245 : vector<16x1xf32> to vector<16x16xf32>
    %247 = arith.subf %243, %246 : vector<16x16xf32>
    %248 = math.exp %247 : vector<16x16xf32>
    %cst_81 = arith.constant dense<0.000000e+00> : vector<16xf32>
    %249 = vector.multi_reduction <add>, %248, %cst_81 [1] : vector<16x16xf32> to vector<16xf32>
    %250 = vector.shape_cast %249 : vector<16xf32> to vector<16x1xf32>
    %251 = vector.broadcast %250 : vector<16x1xf32> to vector<16x16xf32>
    %252 = arith.divf %248, %251 : vector<16x16xf32>
    %cst_82 = arith.constant dense<0.000000e+00> : vector<16x8xf32>
    %253 = tpu.matmul %252, %239, %cst_82 {dimension_numbers = #tpu.dot_dimension_numbers<[1], [0], [0], [1], [0, 0, 1, 1], [], []>} : vector<16x16xf32>, vector<16x8xf32>, vector<16x8xf32> -> vector<16x8xf32>
    %254 = tpu.concatenate %202, %219, %236, %253 in 1 : vector<16x8xf32>, vector<16x8xf32>, vector<16x8xf32>, vector<16x8xf32> -> vector<16x32xf32>
    %c1_83 = arith.constant 1 : index
    %c0_84 = arith.constant 0 : index
    %c0_85 = arith.constant 0 : index
    %255 = vector.load %arg5[%c1_83, %c0_84, %c0_85] : memref<2x32x32xf32, #tpu.memory_space<vmem>>, vector<1x32x32xf32>
    %256 = vector.shape_cast %255 : vector<1x32x32xf32> to vector<32x32xf32>
    %cst_86 = arith.constant dense<0.000000e+00> : vector<16x32xf32>
    %257 = tpu.matmul %254, %256, %cst_86 {dimension_numbers = #tpu.dot_dimension_numbers<[1], [0], [0], [1], [0, 0, 1, 1], [], []>} : vector<16x32xf32>, vector<32x32xf32>, vector<16x32xf32> -> vector<16x32xf32>
    %258 = vector.broadcast %154 : vector<1x32xf32> to vector<16x32xf32>
    %259 = arith.addf %257, %258 : vector<16x32xf32>
    %260 = arith.addf %148, %259 : vector<16x32xf32>
    %cst_87 = arith.constant dense<0.000000e+00> : vector<16xf32>
    %261 = vector.multi_reduction <add>, %260, %cst_87 [1] : vector<16x32xf32> to vector<16xf32>
    %262 = vector.shape_cast %261 : vector<16xf32> to vector<16x1xf32>
    %cst_88 = arith.constant 3.200000e+01 : f32
    %263 = vector.broadcast %cst_88 : f32 to vector<16x1xf32>
    %264 = arith.divf %262, %263 : vector<16x1xf32>
    %265 = vector.broadcast %264 : vector<16x1xf32> to vector<16x32xf32>
    %266 = arith.subf %260, %265 : vector<16x32xf32>
    %267 = arith.mulf %266, %266 : vector<16x32xf32>
    %cst_89 = arith.constant dense<0.000000e+00> : vector<16xf32>
    %268 = vector.multi_reduction <add>, %267, %cst_89 [1] : vector<16x32xf32> to vector<16xf32>
    %269 = vector.shape_cast %268 : vector<16xf32> to vector<16x1xf32>
    %cst_90 = arith.constant 3.200000e+01 : f32
    %270 = vector.broadcast %cst_90 : f32 to vector<16x1xf32>
    %271 = arith.divf %269, %270 : vector<16x1xf32>
    %272 = vector.broadcast %264 : vector<16x1xf32> to vector<16x32xf32>
    %273 = arith.subf %260, %272 : vector<16x32xf32>
    %cst_91 = arith.constant 9.99999974E-6 : f32
    %274 = vector.broadcast %cst_91 : f32 to vector<16x1xf32>
    %275 = arith.addf %271, %274 : vector<16x1xf32>
    %276 = math.rsqrt %275 : vector<16x1xf32>
    %277 = vector.broadcast %276 : vector<16x1xf32> to vector<16x32xf32>
    %278 = arith.mulf %273, %277 : vector<16x32xf32>
    %279 = vector.broadcast %155 : vector<1x32xf32> to vector<16x32xf32>
    %280 = arith.mulf %278, %279 : vector<16x32xf32>
    %281 = vector.broadcast %156 : vector<1x32xf32> to vector<16x32xf32>
    %282 = arith.addf %280, %281 : vector<16x32xf32>
    %c1_92 = arith.constant 1 : index
    %c0_93 = arith.constant 0 : index
    %c0_94 = arith.constant 0 : index
    %283 = vector.load %arg6[%c1_92, %c0_93, %c0_94] : memref<2x32x64xf32, #tpu.memory_space<vmem>>, vector<1x32x64xf32>
    %284 = vector.shape_cast %283 : vector<1x32x64xf32> to vector<32x64xf32>
    %cst_95 = arith.constant dense<0.000000e+00> : vector<16x64xf32>
    %285 = tpu.matmul %282, %284, %cst_95 {dimension_numbers = #tpu.dot_dimension_numbers<[1], [0], [0], [1], [0, 0, 1, 1], [], []>} : vector<16x32xf32>, vector<32x64xf32>, vector<16x64xf32> -> vector<16x64xf32>
    %286 = vector.broadcast %157 : vector<1x64xf32> to vector<16x64xf32>
    %287 = arith.addf %285, %286 : vector<16x64xf32>
    %cst_96 = arith.constant 0.000000e+00 : f32
    %288 = vector.broadcast %cst_96 : f32 to vector<16x64xf32>
    %289 = arith.maximumf %287, %288 : vector<16x64xf32>
    %c1_97 = arith.constant 1 : index
    %c0_98 = arith.constant 0 : index
    %c0_99 = arith.constant 0 : index
    %290 = vector.load %arg7[%c1_97, %c0_98, %c0_99] : memref<2x64x32xf32, #tpu.memory_space<vmem>>, vector<1x64x32xf32>
    %291 = vector.shape_cast %290 : vector<1x64x32xf32> to vector<64x32xf32>
    %cst_100 = arith.constant dense<0.000000e+00> : vector<16x32xf32>
    %292 = tpu.matmul %289, %291, %cst_100 {dimension_numbers = #tpu.dot_dimension_numbers<[1], [0], [0], [1], [0, 0, 1, 1], [], []>} : vector<16x64xf32>, vector<64x32xf32>, vector<16x32xf32> -> vector<16x32xf32>
    %293 = arith.addf %260, %292 : vector<16x32xf32>
    %294 = vector.broadcast %158 : vector<1x32xf32> to vector<16x32xf32>
    %295 = arith.addf %293, %294 : vector<16x32xf32>
    %c0_101 = arith.constant 0 : index
    %c0_102 = arith.constant 0 : index
    %296 = vector.load %arg9[%c0_101, %c0_102] : memref<1x32xf32, #tpu.memory_space<vmem>>, vector<1x32xf32>
    %c0_103 = arith.constant 0 : index
    %c0_104 = arith.constant 0 : index
    %297 = vector.load %arg10[%c0_103, %c0_104] : memref<1x32xf32, #tpu.memory_space<vmem>>, vector<1x32xf32>
    %cst_105 = arith.constant dense<0.000000e+00> : vector<16xf32>
    %298 = vector.multi_reduction <add>, %295, %cst_105 [1] : vector<16x32xf32> to vector<16xf32>
    %299 = vector.shape_cast %298 : vector<16xf32> to vector<16x1xf32>
    %cst_106 = arith.constant 3.200000e+01 : f32
    %300 = vector.broadcast %cst_106 : f32 to vector<16x1xf32>
    %301 = arith.divf %299, %300 : vector<16x1xf32>
    %302 = vector.broadcast %301 : vector<16x1xf32> to vector<16x32xf32>
    %303 = arith.subf %295, %302 : vector<16x32xf32>
    %304 = arith.mulf %303, %303 : vector<16x32xf32>
    %cst_107 = arith.constant dense<0.000000e+00> : vector<16xf32>
    %305 = vector.multi_reduction <add>, %304, %cst_107 [1] : vector<16x32xf32> to vector<16xf32>
    %306 = vector.shape_cast %305 : vector<16xf32> to vector<16x1xf32>
    %cst_108 = arith.constant 3.200000e+01 : f32
    %307 = vector.broadcast %cst_108 : f32 to vector<16x1xf32>
    %308 = arith.divf %306, %307 : vector<16x1xf32>
    %309 = vector.broadcast %301 : vector<16x1xf32> to vector<16x32xf32>
    %310 = arith.subf %295, %309 : vector<16x32xf32>
    %cst_109 = arith.constant 9.99999974E-6 : f32
    %311 = vector.broadcast %cst_109 : f32 to vector<16x1xf32>
    %312 = arith.addf %308, %311 : vector<16x1xf32>
    %313 = math.rsqrt %312 : vector<16x1xf32>
    %314 = vector.broadcast %313 : vector<16x1xf32> to vector<16x32xf32>
    %315 = arith.mulf %310, %314 : vector<16x32xf32>
    %316 = vector.broadcast %296 : vector<1x32xf32> to vector<16x32xf32>
    %317 = arith.mulf %315, %316 : vector<16x32xf32>
    %318 = vector.broadcast %297 : vector<1x32xf32> to vector<16x32xf32>
    %319 = arith.addf %317, %318 : vector<16x32xf32>
    %c0_110 = arith.constant 0 : index
    %c0_111 = arith.constant 0 : index
    %320 = vector.load %arg3[%c0_110, %c0_111] : memref<16x1xf32, #tpu.memory_space<vmem>>, vector<16x1xf32>
    %321 = vector.broadcast %320 : vector<16x1xf32> to vector<16x32xf32>
    %322 = arith.mulf %319, %321 : vector<16x32xf32>
    %323 = vector.extract_strided_slice %322 {offsets = [0, 0], sizes = [8, 32], strides = [1, 1]} : vector<16x32xf32> to vector<8x32xf32>
    %cst_112 = arith.constant dense<0.000000e+00> : vector<32xf32>
    %324 = vector.multi_reduction <add>, %323, %cst_112 [0] : vector<8x32xf32> to vector<32xf32>
    %325 = vector.shape_cast %324 : vector<32xf32> to vector<1x32xf32>
    %326 = vector.extract_strided_slice %322 {offsets = [8, 0], sizes = [8, 32], strides = [1, 1]} : vector<16x32xf32> to vector<8x32xf32>
    %cst_113 = arith.constant dense<0.000000e+00> : vector<32xf32>
    %327 = vector.multi_reduction <add>, %326, %cst_113 [0] : vector<8x32xf32> to vector<32xf32>
    %328 = vector.shape_cast %327 : vector<32xf32> to vector<1x32xf32>
    %329 = tpu.concatenate %325, %328 in 0 : vector<1x32xf32>, vector<1x32xf32> -> vector<2x32xf32>
    %c0_114 = arith.constant 0 : index
    %c0_115 = arith.constant 0 : index
    %330 = vector.load %arg11[%c0_114, %c0_115] : memref<2x32xf32, #tpu.memory_space<vmem>>, vector<2x32xf32>
    tpu.vector_store %arg11[%c0_114, %c0_115], %329 {strides = array<i32>} : memref<2x32xf32, #tpu.memory_space<vmem>>, vector<2x32xf32>,
    return
  }
  func.func @transform_0(%arg0: i32) -> (i32, i32) {
    %c0_i32 = arith.constant 0 : i32
    %c0_i32_0 = arith.constant 0 : i32
    %c0_i32_1 = arith.constant 0 : i32
    return %c0_i32, %c0_i32_0 : i32, i32
  }
  func.func @transform_1(%arg0: i32) -> (i32, i32) {
    %c0_i32 = arith.constant 0 : i32
    %c0_i32_0 = arith.constant 0 : i32
    %c0_i32_1 = arith.constant 0 : i32
    return %c0_i32, %c0_i32_0 : i32, i32
  }
  func.func @transform_2(%arg0: i32) -> (i32, i32) {
    %c0_i32 = arith.constant 0 : i32
    %c0_i32_0 = arith.constant 0 : i32
    %c0_i32_1 = arith.constant 0 : i32
    return %c0_i32, %c0_i32_0 : i32, i32
  }
  func.func @transform_3(%arg0: i32) -> (i32, i32, i32) {
    %c0_i32 = arith.constant 0 : i32
    %c0_i32_0 = arith.constant 0 : i32
    %c0_i32_1 = arith.constant 0 : i32
    %c0_i32_2 = arith.constant 0 : i32
    return %c0_i32, %c0_i32_0, %c0_i32_1 : i32, i32, i32
  }
  func.func @transform_4(%arg0: i32) -> (i32, i32, i32) {
    %c0_i32 = arith.constant 0 : i32
    %c0_i32_0 = arith.constant 0 : i32
    %c0_i32_1 = arith.constant 0 : i32
    %c0_i32_2 = arith.constant 0 : i32
    return %c0_i32, %c0_i32_0, %c0_i32_1 : i32, i32, i32
  }
  func.func @transform_5(%arg0: i32) -> (i32, i32, i32) {
    %c0_i32 = arith.constant 0 : i32
    %c0_i32_0 = arith.constant 0 : i32
    %c0_i32_1 = arith.constant 0 : i32
    %c0_i32_2 = arith.constant 0 : i32
    return %c0_i32, %c0_i32_0, %c0_i32_1 : i32, i32, i32
  }
  func.func @transform_6(%arg0: i32) -> (i32, i32, i32) {
    %c0_i32 = arith.constant 0 : i32
    %c0_i32_0 = arith.constant 0 : i32
    %c0_i32_1 = arith.constant 0 : i32
    %c0_i32_2 = arith.constant 0 : i32
    return %c0_i32, %c0_i32_0, %c0_i32_1 : i32, i32, i32
  }
  func.func @transform_7(%arg0: i32) -> (i32, i32, i32) {
    %c0_i32 = arith.constant 0 : i32
    %c0_i32_0 = arith.constant 0 : i32
    %c0_i32_1 = arith.constant 0 : i32
    %c0_i32_2 = arith.constant 0 : i32
    return %c0_i32, %c0_i32_0, %c0_i32_1 : i32, i32, i32
  }
  func.func @transform_8(%arg0: i32) -> (i32, i32) {
    %c0_i32 = arith.constant 0 : i32
    %c0_i32_0 = arith.constant 0 : i32
    %c0_i32_1 = arith.constant 0 : i32
    return %c0_i32, %c0_i32_0 : i32, i32
  }
  func.func @transform_9(%arg0: i32) -> (i32, i32) {
    %c0_i32 = arith.constant 0 : i32
    %c0_i32_0 = arith.constant 0 : i32
    %c0_i32_1 = arith.constant 0 : i32
    return %c0_i32, %c0_i32_0 : i32, i32
  }
  func.func @transform_10(%arg0: i32) -> (i32, i32) {
    %c0_i32 = arith.constant 0 : i32
    %c0_i32_0 = arith.constant 0 : i32
    %c0_i32_1 = arith.constant 0 : i32
    return %c0_i32, %c0_i32_0 : i32, i32
  }
}

</mosaic_0001>

<bundles_post_ra>
// kernel: sonar_encoder_forward.1
= control target key start
LH: loop header
LB: loop body
LE: loop exit
PB: predicated region body
PF: predicated region fallthrough
CT: control target
= control target key end

     0   :  { %vm41_vm0 = vcmask 261120   ;;  %s4131_s0 = inlined_call_operand.vmem [shape: f32[16,32], index: 0, kind: input, shape index: {}]   ;;  %s4132_s1 = inlined_call_operand.vmem [shape: f32[16,16], index: 1, kind: input, shape index: {}]   ;;  %s4133_s2 = inlined_call_operand.vmem [shape: f32[16,1], index: 2, kind: input, shape index: {}]   ;;  %s4134_s3 = inlined_call_operand.vmem [shape: f32[2,32,96], index: 3, kind: input, shape index: {}]   ;;  %s4135_s4 = inlined_call_operand.vmem [shape: f32[2,32,32], index: 4, kind: input, shape index: {}]   ;;  %s4136_s5 = inlined_call_operand.vmem [shape: f32[2,32,64], index: 5, kind: input, shape index: {}]   ;;  %s4137_s6 = inlined_call_operand.vmem [shape: f32[2,64,32], index: 6, kind: input, shape index: {}]   ;;  %s4138_s7 = inlined_call_operand.vmem [shape: f32[2,8,128], index: 7, kind: input, shape index: {}]   ;;  %s4139_s8 = inlined_call_operand.vmem [shape: f32[1,32], index: 8, kind: input, shape index: {}]   ;;  %s4140_s9 = inlined_call_operand.vmem [shape: f32[1,32], index: 9, kind: input, shape index: {}]   ;;  %s4141_s10 = inlined_call_operand.hbm [shape: f32[2,32], index: 10, kind: output, shape index: {}]  }
   0x1   :  { %v3584_v0 = vld [vmem:[%s4131_s0] sm:$0xff]  ;;  %v3589_v1 = vld [vmem:[%s4131_s0 + $0x8] sm:$0xff] }
   0x2   :  { %15 = vsyncpa [#allocation3], 0  ;;  %v42_v2 = vsel %vm41_vm0, %v3584_v0, 0.0  ;;  %v45_v3 = vsel %vm41_vm0, %v3589_v1, 0.0  ;;  %v81_v14 = vld [vmem:[%s4134_s3] sm:$0xff]  ;;  %v82_v15 = vld [vmem:[%s4134_s3 + $0x8] sm:$0xff]  ;;  %v69_v22 = vlaneseq }
   0x3   :  { %43 = vadd.xlane.f32.xlu0 %v42_v2  ;;  %v83_v16 = vld [vmem:[%s4134_s3 + $0x10] sm:$0xff]  ;;  %v3142_v17 = vpack.c.bf16 %v82_v15, %v81_v14  ;;  %v84_v18 = vld [vmem:[%s4134_s3 + $0x18] sm:$0xff]  ;;  %v3617_v29 = vld [vmem:[%s4138_s7] sm:$0xff]  ;;  %vm176_vm1 = vcmask 64512   ;;  %s3510_s26 = smov 88   ;;  %s3511_s27 = smov 96  }
   0x4   :  { %v3146_v19 = vpack.c.bf16 %v84_v18, %v83_v16  ;;  %v3611_v26 = vshrl.u32 %v69_v22, 7  ;;  %s3512_s28 = smov 120   ;;  %vm3652_vm2 = vmpackc.low %vm176_vm1, %vm176_vm1  ;;  %v3671_v60 = vld [vmem:[%s4132_s1 + $0x8] sm:$0xff]  ;;  %v3676_v63 = vld [vmem:[%s4132_s1] sm:$0xff]  ;;  %vm264_vm3 = vcmask 130048   ;;  %s3513_s13 = smov 56  }
   0x5   :  { %3143 = vmatprep.subr.bf16.mxu1 %v3142_v17  ;;  %s3514_s14 = smov 64   ;;  %s3515_s15 = smov 80   ;;  %vm1014_vm4 = vcmask 195584   ;;  %vm1245_vm5 = vcmask 523264   ;;  %vm2701_vm6 = vcmask 1040384   ;;  %vm2703_vm7 = vcmask 254976  }
   0x6   :  { %3145 = vmatpush3.bf16.msra.mxu1 %v3142_v17  ;;  %v71_v28 = vsub.s32 0, %v3611_v26  ;;  %v77_v30 = vsub.s32 1, %v3611_v26  ;;  %v87_v41 = vsub.s32 2, %v3611_v26  ;;  %s3516_s16 = smov 112   ;;  %s3517_s0 = smov 48  }
   0x7   :  { %46 = vadd.xlane.f32.xlu0 %v45_v3  ;;  %3147 = vmatprep.subr.bf16.mxu1 %v3146_v19  ;;  %s3518_s17 = smov 104   ;;  %s3519_s18 = smov 72  }
   0x8   :  { %v72_v31 = vrot.slane %v3617_v29, %v71_v28  ;;  %v78_v34 = vrot.slane %v3617_v29, %v77_v30  ;;  %v88_v42 = vrot.slane %v3617_v29, %v87_v41  ;;  %s3520_s19 = smov 40   ;;  %s4146_s20 = smov 8  }
   0x9   :  { %s4144_s21 = smov 16   ;;  %s4142_s22 = smov 24  }
   0xa   :  { %3149 = vmatpush3.bf16.msra.mxu1 %v3146_v19  ;;  %s4152_s30 = smov 24  }
  0x90   :  { %v44_v4 = vpop.xlane.xlu0 %43 }
  0x91   :  { %v49_v5 = vmul.f32 0.03125, %v44_v4 }
  0x93   :  { %v51_v6 = vsub.f32 %v3584_v0, %v49_v5 }
  0x94   :  { %v47_v7 = vpop.xlane.xlu0 %46 }
  0x95   :  { %v50_v8 = vmul.f32 0.03125, %v47_v7  ;;  %v53_v9 = vmul.f32 %v51_v6, %v51_v6 }
  0x97   :  { %v52_v10 = vsub.f32 %v3589_v1, %v50_v8  ;;  %v55_v11 = vsel %vm41_vm0, %v53_v9, 0.0 }
  0x98   :  { %56 = vadd.xlane.f32.xlu1 %v55_v11 }
  0x99   :  { %v54_v12 = vmul.f32 %v52_v10, %v52_v10 }
  0x9b   :  { %v58_v13 = vsel %vm41_vm0, %v54_v12, 0.0 }
  0x9c   :  { %59 = vadd.xlane.f32.xlu1 %v58_v13 }
 0x125   :  { %v57_v20 = vpop.xlane.xlu1 %56 }
 0x126   :  { %v61_v21 = vmul.f32 0.03125, %v57_v20 }
 0x128   :  { %v63_v23 = vadd.f32 1e-05, %v61_v21 }
 0x129   :  { %v60_v24 = vpop.xlane.xlu1 %59 }
 0x12a   :  { %3400 = vrsqrt.f32 %v63_v23  ;;  %v62_v25 = vmul.f32 0.03125, %v60_v24 }
 0x12c   :  { %v64_v27 = vadd.f32 1e-05, %v62_v25 }
 0x12e   :  { %3402 = vrsqrt.f32 %v64_v27 }
 0x134   :  { %v3401_v32 = vpop.eup %3400 }
 0x135   :  { %v67_v33 = vmul.f32 %v3401_v32, %v51_v6 }
 0x137   :  { %v73_v35 = vmul.f32 %v72_v31, %v67_v33 }
 0x138   :  { %v3403_v36 = vpop.eup %3402 }
 0x139   :  { %v68_v37 = vmul.f32 %v3403_v36, %v52_v10  ;;  %v79_v38 = vadd.f32 %v78_v34, %v73_v35 }
 0x13b   :  { %v74_v39 = vmul.f32 %v72_v31, %v68_v37  ;;  %2934 = vmatprep.mubr.msk.f32.mxu1 %vm41_vm0, %v79_v38 }
 0x13d   :  { %v80_v40 = vadd.f32 %v78_v34, %v74_v39 }
 0x13f   :  { %2935 = vmatmul.mubr.msk.f32.vlgmr.msra.gmra.mrb[0].mxu1 %vm41_vm0, %v80_v40 }
 0x212   :  { %v2936_v43 = vpop.f32.mrb[0].mxu1 }
 0x213   :  { %v3632_v44 = vadd.f32 %v2936_v43, %v88_v42  ;;  %v161_v45 = vpop.f32.mrb[1].mxu1 }
 0x214   :  { %v3634_v46 = vadd.f32 %v161_v45, %v88_v42 }
 0x216   :  { %2941 = vmatprep.mubr.msk.f32.mxu1 %vm176_vm1, %v3634_v46  ;;  %v3640_v47 = vpack.i.bf16 %v3632_v44, %v3634_v46 }
 0x218   :  { %3324 = vrot.lane.b32.xlu1 %v3640_v47, %s3510_s26  ;;  %3319 = vrot.lane.b32.xlu0 %v3640_v47, %s3511_s27 }
 0x21c   :  { %374 = vrot.lane.b32.xlu1 %v3634_v46, %s3512_s28 }
 0x220   :  { %376 = vrot.lane.b32.xlu1 %v3632_v44, %s3512_s28 }
 0x28a   :  { %v3325_v48 = vpop.permute.xlu1 %3324  ;;  %v3320_v49 = vpop.permute.xlu0 %3319 }
 0x28b   :  { %v3327_v50 = vunpack.i.h.bf16 %v3325_v48  ;;  %v3326_v51 = vunpack.i.l.bf16 %v3325_v48  ;;  %v3322_v52 = vunpack.i.h.bf16 %v3320_v49  ;;  %v3321_v53 = vunpack.i.l.bf16 %v3320_v49 }
 0x28d   :  { %v3150_v55 = vpack.c.bf16 %v3322_v52, %v3321_v53  ;;  %v3160_v56 = vpack.c.bf16 %v3327_v50, %v3326_v51 }
 0x28e   :  { %v375_v57 = vpop.permute.xlu1 %374 }
 0x28f   :  { %3152 = vmatprep.subr.msk.bf16.mxu1 %vm3652_vm2, %v3150_v55 }
 0x290   :  { %3155 = vmatpush3.bf16.xpose.msk.msra.mxu1 %vm3652_vm2, %v3150_v55 }
 0x291   :  { %3162 = vmatprep.subr.msk.bf16.mxu1 %vm3652_vm2, %v3160_v56 }
 0x292   :  { %v377_v58 = vpop.permute.xlu1 %376 }
 0x297   :  { %2942 = vmatmul.mubr.msk.f32.vlgmr.msra.gmra.mrb[2].mxu1 %vm176_vm1, %v3632_v44 }
 0x298   :  { %3165 = vmatpush3.bf16.xpose.msk.msra.mxu1 %vm3652_vm2, %v3160_v56  ;;  %2955 = vmatprep.mubr.msk.f32.mxu1 %vm176_vm1, %v375_v57 }
 0x29f   :  { %2956 = vmatmul.mubr.msk.f32.vlgmr.msra.gmra.mrb[4].mxu1 %vm176_vm1, %v377_v58 }
 0x36a   :  { %v2943_v59 = vpop.f32.mrb[2].mxu1 }
 0x36b   :  { %v261_v61 = vmul.f32 0.35355338, %v2943_v59  ;;  %v251_v62 = vpop.f32.mrb[3].mxu1 }
 0x36c   :  { %v260_v2 = vmul.f32 0.35355338, %v251_v62 }
 0x36d   :  { %v263_v3 = vadd.f32 %v261_v61, %v3671_v60 }
 0x36e   :  { %v262_v4 = vadd.f32 %v260_v2, %v3676_v63 }
 0x36f   :  { %v268_v5 = vsel %vm264_vm3, %v263_v3, -inf }
 0x370   :  { %269 = vmax.xlane.f32.xlu1 %v268_v5  ;;  %v265_v6 = vsel %vm264_vm3, %v262_v4, -inf }
 0x371   :  { %266 = vmax.xlane.f32.xlu0 %v265_v6 }
 0x372   :  { %v2957_v7 = vpop.f32.mrb[4].mxu1 }
 0x373   :  { %v456_v8 = vpop.f32.mrb[5].mxu1  ;;  %v466_v9 = vmul.f32 0.35355338, %v2957_v7 }
 0x374   :  { %v465_v10 = vmul.f32 0.35355338, %v456_v8 }
 0x375   :  { %v468_v13 = vadd.f32 %v466_v9, %v3671_v60 }
 0x376   :  { %v467_v11 = vadd.f32 %v465_v10, %v3676_v63 }
 0x377   :  { %v472_v14 = vsel %vm264_vm3, %v468_v13, -inf }
 0x378   :  { %v469_v12 = vsel %vm264_vm3, %v467_v11, -inf }
 0x379   :  { %470 = vmax.xlane.f32.xlu0 %v469_v12 }
 0x37d   :  { %473 = vmax.xlane.f32.xlu0 %v472_v14 }
 0x3fd   :  { %v270_v15 = vpop.xlane.xlu1 %269 }
 0x3fe   :  { %v272_v16 = vsub.f32 %v263_v3, %v270_v15  ;;  %v267_v17 = vpop.xlane.xlu0 %266 }
 0x3ff   :  { %v271_v18 = vsub.f32 %v262_v4, %v267_v17 }
 0x400   :  { %v275_v19 = vmul.f32 1.442695, %v272_v16 }
 0x401   :  { %v273_v20 = vmul.f32 1.442695, %v271_v18 }
 0x402   :  { %3404 = vpow2.f32 %v275_v19 }
 0x403   :  { %3406 = vpow2.f32 %v273_v20 }
 0x406   :  { %v471_v21 = vpop.xlane.xlu0 %470 }
 0x407   :  { %v475_v22 = vsub.f32 %v467_v11, %v471_v21 }
 0x409   :  { %v477_v23 = vmul.f32 1.442695, %v475_v22 }
 0x40a   :  { %v474_v24 = vpop.xlane.xlu0 %473 }
 0x40b   :  { %3408 = vpow2.f32 %v477_v23  ;;  %v476_v25 = vsub.f32 %v468_v13, %v474_v24 }
 0x40c   :  { %v3405_v27 = vpop.eup %3404 }
 0x40d   :  { %v3407_v31 = vpop.eup %3406  ;;  %v479_v32 = vmul.f32 1.442695, %v476_v25  ;;  %v280_v33 = vsel %vm264_vm3, %v3405_v27, 0.0 }
 0x40e   :  { %281 = vadd.xlane.f32.xlu1 %v280_v33  ;;  %v277_v34 = vsel %vm264_vm3, %v3407_v31, 0.0 }
 0x40f   :  { %3410 = vpow2.f32 %v479_v32  ;;  %278 = vadd.xlane.f32.xlu0 %v277_v34 }
 0x415   :  { %v3409_v35 = vpop.eup %3408 }
 0x416   :  { %v481_v36 = vsel %vm264_vm3, %v3409_v35, 0.0 }
 0x417   :  { %482 = vadd.xlane.f32.xlu0 %v481_v36 }
 0x419   :  { %v3411_v37 = vpop.eup %3410 }
 0x41a   :  { %v484_v38 = vsel %vm264_vm3, %v3411_v37, 0.0 }
 0x41b   :  { %485 = vadd.xlane.f32.xlu1 %v484_v38 }
 0x42c   :  { %3334 = vrot.lane.b32.xlu1 %v3640_v47, %s3513_s13 }
 0x42d   :  { %3329 = vrot.lane.b32.xlu0 %v3640_v47, %s3514_s14 }
 0x430   :  { %3339 = vrot.lane.b32.xlu1 %v3640_v47, %s3515_s15 }
 0x431   :  { %580 = vrot.lane.b32.xlu0 %v3632_v44, %s3516_s16 }
 0x434   :  { %578 = vrot.lane.b32.xlu1 %v3634_v46, %s3516_s16 }
 0x49b   :  { %v282_v40 = vpop.xlane.xlu1 %281 }
 0x49c   :  { %v279_v39 = vpop.xlane.xlu0 %278 }
 0x49d   :  { %3412 = vrcp.f32 %v279_v39 }
 0x49e   :  { %3414 = vrcp.f32 %v282_v40 }
 0x4a4   :  { %v483_v42 = vpop.xlane.xlu0 %482 }
 0x4a5   :  { %3416 = vrcp.f32 %v483_v42 }
 0x4a7   :  { %v3413_v43 = vpop.eup %3412 }
 0x4a8   :  { %v486_v45 = vpop.xlane.xlu1 %485  ;;  %v3330_v48 = vpop.permute.xlu0 %3329  ;;  %v284_v49 = vmul.f32 %v3413_v43, %v3407_v31 }
 0x4a9   :  { %3418 = vrcp.f32 %v486_v45  ;;  %v3332_v50 = vunpack.i.h.bf16 %v3330_v48  ;;  %v3331_v51 = vunpack.i.l.bf16 %v3330_v48  ;;  %v3415_v53 = vpop.eup %3414 }
 0x4aa   :  { %2948 = vmatprep.mubr.msk.f32.mxu0 %vm264_vm3, %v284_v49  ;;  %v286_v61 = vmul.f32 %v3415_v53, %v3405_v27 }
 0x4ab   :  { %v3156_v52 = vpack.c.bf16 %v3332_v50, %v3331_v51 }
 0x4ac   :  { %v3335_v55 = vpop.permute.xlu1 %3334  ;;  %v581_v9 = vpop.permute.xlu0 %580 }
 0x4ad   :  { %v3337_v56 = vunpack.i.h.bf16 %v3335_v55  ;;  %v3336_v57 = vunpack.i.l.bf16 %v3335_v55  ;;  %3157 = vmatprep.subr.bf16.mxu0 %v3156_v52 }
 0x4ae   :  { %3159 = vmatpush3.bf16.msra.mxu0 %v3156_v52 }
 0x4af   :  { %v3417_v58 = vpop.eup %3416  ;;  %v3166_v59 = vpack.c.bf16 %v3337_v56, %v3336_v57 }
 0x4b0   :  { %v3340_v62 = vpop.permute.xlu1 %3339  ;;  %v488_v2 = vmul.f32 %v3417_v58, %v3409_v35 }
 0x4b1   :  { %v3342_v3 = vunpack.i.h.bf16 %v3340_v62  ;;  %v3341_v4 = vunpack.i.l.bf16 %v3340_v62  ;;  %2949 = vmatmul.mubr.msk.f32.vlgmr.msra.gmra.mrb[0].mxu0 %vm264_vm3, %v286_v61  ;;  %3167 = vmatprep.subr.bf16.mxu0 %v3166_v59 }
 0x4b2   :  { %3169 = vmatpush3.bf16.msra.mxu0 %v3166_v59  ;;  %2962 = vmatprep.mubr.msk.f32.mxu0 %vm264_vm3, %v488_v2 }
 0x4b3   :  { %v3419_v5 = vpop.eup %3418  ;;  %v3170_v6 = vpack.c.bf16 %v3342_v3, %v3341_v4 }
 0x4b4   :  { %v490_v7 = vmul.f32 %v3419_v5, %v3411_v37  ;;  %v579_v8 = vpop.permute.xlu1 %578 }
 0x4b5   :  { %3172 = vmatprep.subr.msk.bf16.mxu0 %vm3652_vm2, %v3170_v6 }
 0x4b6   :  { %2963 = vmatmul.mubr.msk.f32.vlgmr.msra.gmra.mrb[2].mxu0 %vm264_vm3, %v490_v7 }
 0x4b7   :  { %2969 = vmatprep.mubr.msk.f32.mxu0 %vm176_vm1, %v579_v8 }
 0x4bb   :  { %3175 = vmatpush3.bf16.xpose.msk.msra.mxu0 %vm3652_vm2, %v3170_v6 }
 0x4c2   :  { %2970 = vmatmul.mubr.msk.f32.vlgmr.msra.gmra.mrb[4].mxu0 %vm176_vm1, %v581_v9 }
 0x584   :  { %v3710_v10 = vpop.f32.mrb[0].mxu0 }
 0x585   :  { %v3712_v11 = vpop.f32.mrb[1].mxu0 }
 0x589   :  { %v3714_v12 = vpop.f32.mrb[2].mxu0 }
 0x58a   :  { %v3716_v13 = vpop.f32.mrb[3].mxu0 }
 0x595   :  { %v2971_v14 = vpop.f32.mrb[4].mxu0 }
 0x596   :  { %v670_v15 = vmul.f32 0.35355338, %v2971_v14  ;;  %v660_v16 = vpop.f32.mrb[5].mxu0 }
 0x597   :  { %v669_v17 = vmul.f32 0.35355338, %v660_v16 }
 0x598   :  { %v672_v18 = vadd.f32 %v670_v15, %v3671_v60 }
 0x599   :  { %v671_v19 = vadd.f32 %v669_v17, %v3676_v63 }
 0x59a   :  { %v676_v20 = vsel %vm264_vm3, %v672_v18, -inf }
 0x59b   :  { %677 = vmax.xlane.f32.xlu0 %v676_v20  ;;  %v673_v21 = vsel %vm264_vm3, %v671_v19, -inf }
 0x59c   :  { %674 = vmax.xlane.f32.xlu1 %v673_v21 }
 0x5ad   :  { %3344 = vrot.lane.b32.xlu1 %v3640_v47, %s3517_s0 }
 0x5b1   :  { %782 = vrot.lane.b32.xlu1 %v3634_v46, %s3518_s17 }
 0x5b5   :  { %784 = vrot.lane.b32.xlu1 %v3632_v44, %s3518_s17 }
 0x628   :  { %v678_v22 = vpop.xlane.xlu0 %677 }
 0x629   :  { %v680_v23 = vsub.f32 %v672_v18, %v678_v22  ;;  %v675_v24 = vpop.xlane.xlu1 %674 }
 0x62a   :  { %v679_v25 = vsub.f32 %v671_v19, %v675_v24 }
 0x62b   :  { %v683_v27 = vmul.f32 1.442695, %v680_v23 }
 0x62c   :  { %v681_v31 = vmul.f32 1.442695, %v679_v25 }
 0x62d   :  { %3420 = vpow2.f32 %v683_v27  ;;  %v3345_v32 = vpop.permute.xlu1 %3344 }
 0x62e   :  { %v3347_v33 = vunpack.i.h.bf16 %v3345_v32  ;;  %v3346_v34 = vunpack.i.l.bf16 %v3345_v32  ;;  %3422 = vpow2.f32 %v681_v31  ;;  %v1017_v31 = vld [vmem:[%s4135_s4] sm:$0xff]  ;;  %v1019_v32 = vld [vmem:[%s4135_s4 + $0x10] sm:$0xff] }
 0x630   :  { %v3176_v35 = vpack.c.bf16 %v3347_v33, %v3346_v34  ;;  %v1020_v34 = vld [vmem:[%s4135_s4 + $0x18] sm:$0xff] }
 0x631   :  { %v783_v52 = vpop.permute.xlu1 %782 }
 0x632   :  { %3177 = vmatprep.subr.bf16.mxu1 %v3176_v35 }
 0x633   :  { %3179 = vmatpush3.bf16.msra.mxu1 %v3176_v35  ;;  %v3194_v35 = vpack.c.bf16 %v1020_v34, %v1019_v32 }
 0x635   :  { %v785_v53 = vpop.permute.xlu1 %784 }
 0x637   :  { %v3421_v36 = vpop.eup %3420 }
 0x638   :  { %v688_v46 = vsel %vm264_vm3, %v3421_v36, 0.0  ;;  %v3423_v37 = vpop.eup %3422 }
 0x639   :  { %689 = vadd.xlane.f32.xlu0 %v688_v46  ;;  %v685_v44 = vsel %vm264_vm3, %v3423_v37, 0.0 }
 0x63d   :  { %686 = vadd.xlane.f32.xlu0 %v685_v44 }
 0x653   :  { %3349 = vrot.lane.b32.xlu0 %v3640_v47, %s3519_s18 }
 0x6c6   :  { %v690_v38 = vpop.xlane.xlu0 %689 }
 0x6c7   :  { %3424 = vrcp.f32 %v690_v38 }
 0x6ca   :  { %v687_v39 = vpop.xlane.xlu0 %686 }
 0x6cb   :  { %3426 = vrcp.f32 %v687_v39 }
 0x6ce   :  { %v3350_v40 = vpop.permute.xlu0 %3349 }
 0x6cf   :  { %v3352_v42 = vunpack.i.h.bf16 %v3350_v40  ;;  %v3351_v43 = vunpack.i.l.bf16 %v3350_v40 }
 0x6d1   :  { %v3180_v45 = vpack.c.bf16 %v3352_v42, %v3351_v43  ;;  %v3425_v48 = vpop.eup %3424 }
 0x6d2   :  { %v694_v51 = vmul.f32 %v3425_v48, %v3421_v36 }
 0x6d3   :  { %3182 = vmatprep.subr.msk.bf16.mxu1 %vm3652_vm2, %v3180_v45 }
 0x6d5   :  { %v3427_v49 = vpop.eup %3426 }
 0x6d6   :  { %v692_v50 = vmul.f32 %v3427_v49, %v3423_v37 }
 0x6d8   :  { %2976 = vmatprep.mubr.msk.f32.mxu1 %vm264_vm3, %v692_v50 }
 0x6d9   :  { %2977 = vmatmul.mubr.msk.f32.vlgmr.msra.gmra.mrb[6].mxu1 %vm264_vm3, %v694_v51 }
 0x6da   :  { %3185 = vmatpush3.bf16.xpose.msk.msra.mxu1 %vm3652_vm2, %v3180_v45  ;;  %2983 = vmatprep.mubr.msk.f32.mxu1 %vm176_vm1, %v783_v52 }
 0x6e1   :  { %2984 = vmatmul.mubr.msk.f32.vlgmr.msra.gmra.mrb[8].mxu1 %vm176_vm1, %v785_v53 }
 0x7ac   :  { %v2978_v55 = vpop.f32.mrb[6].mxu1 }
 0x7ad   :  { %v773_v56 = vpop.f32.mrb[7].mxu1 }
 0x7b4   :  { %v2985_v57 = vpop.f32.mrb[8].mxu1 }
 0x7b5   :  { %v874_v58 = vmul.f32 0.35355338, %v2985_v57  ;;  %v864_v59 = vpop.f32.mrb[9].mxu1 }
 0x7b6   :  { %v873_v61 = vmul.f32 0.35355338, %v864_v59 }
 0x7b7   :  { %v876_v62 = vadd.f32 %v874_v58, %v3671_v60 }
 0x7b8   :  { %v875_v2 = vadd.f32 %v873_v61, %v3676_v63 }
 0x7b9   :  { %v880_v3 = vsel %vm264_vm3, %v876_v62, -inf }
 0x7ba   :  { %881 = vmax.xlane.f32.xlu0 %v880_v3  ;;  %v877_v4 = vsel %vm264_vm3, %v875_v2, -inf }
 0x7bb   :  { %878 = vmax.xlane.f32.xlu1 %v877_v4 }
 0x7cc   :  { %3354 = vrot.lane.b32.xlu1 %v3640_v47, %s3520_s19 }
 0x7d0   :  { %990 = vrot.lane.b32.xlu1 %v3714_v12, %s4146_s20 }
 0x7d4   :  { %996 = vrot.lane.b32.xlu1 %v773_v56, %s4144_s21 }
 0x7d8   :  { %998 = vrot.lane.b32.xlu1 %v2978_v55, %s4144_s21 }
 0x847   :  { %v882_v5 = vpop.xlane.xlu0 %881 }
 0x848   :  { %v884_v6 = vsub.f32 %v876_v62, %v882_v5  ;;  %v879_v7 = vpop.xlane.xlu1 %878 }
 0x849   :  { %v883_v8 = vsub.f32 %v875_v2, %v879_v7 }
 0x84a   :  { %v887_v9 = vmul.f32 1.442695, %v884_v6 }
 0x84b   :  { %v885_v14 = vmul.f32 1.442695, %v883_v8 }
 0x84c   :  { %v3355_v15 = vpop.permute.xlu1 %3354 }
 0x84d   :  { %3428 = vpow2.f32 %v885_v14  ;;  %v3357_v16 = vunpack.i.h.bf16 %v3355_v15  ;;  %v3356_v17 = vunpack.i.l.bf16 %v3355_v15  ;;  %v1147_v14 = vld [vmem:[%s4136_s5 + $0x8] sm:$0xff] }
 0x84e   :  { %3430 = vpow2.f32 %v887_v9  ;;  %v1146_v9 = vld [vmem:[%s4136_s5] sm:$0xff] }
 0x84f   :  { %v3186_v47 = vpack.c.bf16 %v3357_v16, %v3356_v17  ;;  %v3198_v15 = vpack.c.bf16 %v1147_v14, %v1146_v9  ;;  %v1148_v16 = vld [vmem:[%s4136_s5 + $0x10] sm:$0xff]  ;;  %v1149_v17 = vld [vmem:[%s4136_s5 + $0x18] sm:$0xff] }
 0x850   :  { %v991_v37 = vpop.permute.xlu1 %990 }
 0x851   :  { %3187 = vmatprep.subr.bf16.mxu0 %v3186_v47  ;;  %v1011_v43 = vsel %vm176_vm1, %v3710_v10, %v991_v37  ;;  %3199 = vmatprep.subr.bf16.mxu1 %v3198_v15 }
 0x852   :  { %3189 = vmatpush3.bf16.msra.mxu0 %v3186_v47  ;;  %3201 = vmatpush3.bf16.msra.mxu1 %v3198_v15  ;;  %v3202_v47 = vpack.c.bf16 %v1149_v17, %v1148_v16 }
 0x854   :  { %v997_v44 = vpop.permute.xlu1 %996  ;;  %3203 = vmatprep.subr.bf16.mxu1 %v3202_v47 }
 0x856   :  { %3205 = vmatpush3.bf16.msra.mxu1 %v3202_v47 }
 0x857   :  { %v3429_v12 = vpop.eup %3428 }
 0x858   :  { %v889_v18 = vsel %vm264_vm3, %v3429_v12, 0.0  ;;  %v3431_v19 = vpop.eup %3430  ;;  %v999_v39 = vpop.permute.xlu1 %998 }
 0x859   :  { %890 = vadd.xlane.f32.xlu0 %v889_v18  ;;  %v892_v20 = vsel %vm264_vm3, %v3431_v19, 0.0  ;;  %v1013_v49 = vsel %vm264_vm3, %v1011_v43, %v999_v39  ;;  %v1238_v18 = vld [vmem:[%s4137_s6 + $0x8] sm:$0xff] }
 0x85d   :  { %893 = vadd.xlane.f32.xlu0 %v892_v20 }
 0x873   :  { %988 = vrot.lane.b32.xlu0 %v3716_v13, %s4146_s20  ;;  %v1018_v13 = vld [vmem:[%s4135_s4 + $0x8] sm:$0xff] }
 0x874   :  { %v3190_v33 = vpack.c.bf16 %v1018_v13, %v1017_v31 }
 0x876   :  { %3191 = vmatprep.subr.bf16.mxu0 %v3190_v33 }
 0x8e6   :  { %v891_v21 = vpop.xlane.xlu0 %890 }
 0x8e7   :  { %3432 = vrcp.f32 %v891_v21  ;;  %v1240_v21 = vld [vmem:[%s4137_s6 + $0x18] sm:$0xff] }
 0x8ea   :  { %v894_v22 = vpop.xlane.xlu0 %893 }
 0x8eb   :  { %3434 = vrcp.f32 %v894_v22 }
 0x8ee   :  { %v989_v38 = vpop.permute.xlu0 %988 }
 0x8ef   :  { %v1010_v40 = vsel %vm176_vm1, %v3712_v11, %v989_v38  ;;  %v1023_v11 = vsub.s32 3, %v3611_v26 }
 0x8f0   :  { %v1012_v45 = vsel %vm264_vm3, %v1010_v40, %v997_v44 }
 0x8f1   :  { %v3433_v23 = vpop.eup %3432  ;;  %v1024_v52 = vrot.slane %v3617_v29, %v1023_v11 }
 0x8f2   :  { %v896_v24 = vmul.f32 %v3433_v23, %v3429_v12  ;;  %v1237_v12 = vld [vmem:[%s4137_s6] sm:$0xff] }
 0x8f3   :  { %v3206_v20 = vpack.c.bf16 %v1238_v18, %v1237_v12  ;;  %v1241_v23 = vld [vmem:[%s4137_s6 + $0x20] sm:$0xff] }
 0x8f4   :  { %2990 = vmatprep.mubr.msk.f32.mxu0 %vm264_vm3, %v896_v24  ;;  %v1242_v24 = vld [vmem:[%s4137_s6 + $0x28] sm:$0xff] }
 0x8f5   :  { %v3435_v25 = vpop.eup %3434 }
 0x8f6   :  { %v898_v27 = vmul.f32 %v3435_v25, %v3431_v19  ;;  %v1239_v19 = vld [vmem:[%s4137_s6 + $0x10] sm:$0xff]  ;;  %v3214_v25 = vpack.c.bf16 %v1242_v24, %v1241_v23  ;;  %v2755_v23 = vld [vmem:[%s4134_s3 + $0x38] sm:$0xff] }
 0x8f7   :  { %v3210_v22 = vpack.c.bf16 %v1240_v21, %v1239_v19  ;;  %v2752_v19 = vld [vmem:[%s4134_s3 + $0x20] sm:$0xff] }
 0x8f8   :  { %2991 = vmatmul.mubr.msk.f32.vlgmr.msra.gmra.mrb[6].mxu0 %vm264_vm3, %v898_v27 }
 0x8f9   :  { %3193 = vmatpush3.bf16.msra.mxu0 %v3190_v33 }
 0x8fa   :  { %3195 = vmatprep.subr.bf16.mxu0 %v3194_v35 }
 0x8fd   :  { %3197 = vmatpush3.bf16.msra.mxu0 %v3194_v35  ;;  %v1136_v35 = vsub.s32 4, %v3611_v26 }
 0x8fe   :  { %3207 = vmatprep.subr.bf16.mxu0 %v3206_v20 }
 0x9cb   :  { %v2992_v36 = vpop.f32.mrb[6].mxu0 }
 0x9cc   :  { %1006 = vrot.lane.b32.xlu1 %v2992_v36, %s4142_s22  ;;  %v977_v46 = vpop.f32.mrb[7].mxu0  ;;  %v1142_v36 = vsub.s32 5, %v3611_v26 }
 0x9cd   :  { %1004 = vrot.lane.b32.xlu0 %v977_v46, %s4142_s22  ;;  %v1137_v46 = vrot.slane %v3617_v29, %v1136_v35 }
 0x9ce   :  { %v1143_v38 = vrot.slane %v3617_v29, %v1142_v36 }
 0xa3e   :  { %v1007_v42 = vpop.permute.xlu1 %1006 }
 0xa3f   :  { %v1005_v48 = vpop.permute.xlu0 %1004  ;;  %v1016_v51 = vsel %vm1014_vm4, %v1013_v49, %v1007_v42  ;;  %v1243_v49 = vld [vmem:[%s4137_s6 + $0x30] sm:$0xff] }
 0xa40   :  { %v1015_v50 = vsel %vm1014_vm4, %v1012_v45, %v1005_v48 }
 0xa41   :  { %3001 = vmatprep.mubr.msk.f32.mxu0 %vm41_vm0, %v1015_v50  ;;  %v1244_v50 = vld [vmem:[%s4137_s6 + $0x38] sm:$0xff] }
 0xa42   :  { %3002 = vmatmul.mubr.msk.f32.vlgmr.msra.gmra.mrb[8].mxu0 %vm41_vm0, %v1016_v51  ;;  %v3218_v51 = vpack.c.bf16 %v1244_v50, %v1243_v49 }
 0xa43   :  { %3209 = vmatpush3.bf16.msra.mxu0 %v3206_v20  ;;  %v2753_v20 = vld [vmem:[%s4134_s3 + $0x28] sm:$0xff] }
 0xa44   :  { %3211 = vmatprep.subr.bf16.mxu0 %v3210_v22  ;;  %v3222_v21 = vpack.c.bf16 %v2753_v20, %v2752_v19 }
 0xa46   :  { %3223 = vmatprep.subr.bf16.mxu1 %v3222_v21 }
 0xa47   :  { %3213 = vmatpush3.bf16.msra.mxu0 %v3210_v22  ;;  %v2754_v22 = vld [vmem:[%s4134_s3 + $0x30] sm:$0xff] }
 0xa48   :  { %3215 = vmatprep.subr.bf16.mxu0 %v3214_v25  ;;  %v3226_v24 = vpack.c.bf16 %v2755_v23, %v2754_v22 }
 0xa4b   :  { %3217 = vmatpush3.bf16.msra.mxu0 %v3214_v25 }
 0xa4c   :  { %3219 = vmatprep.subr.bf16.mxu0 %v3218_v51 }
 0xa4f   :  { %3221 = vmatpush3.bf16.msra.mxu0 %v3218_v51 }
 0xb15   :  { %v3003_v10 = vpop.f32.mrb[8].mxu0 }
 0xb16   :  { %v1103_v53 = vadd.f32 %v3003_v10, %v1024_v52  ;;  %v1097_v55 = vpop.f32.mrb[9].mxu0 }
 0xb17   :  { %v1098_v56 = vadd.f32 %v1097_v55, %v1024_v52  ;;  %v1152_v52 = vsub.s32 6, %v3611_v26 }
 0xb18   :  { %v3785_v57 = vadd.f32 %v1103_v53, %v3589_v1 }
 0xb19   :  { %v3788_v58 = vadd.f32 %v1098_v56, %v3584_v0  ;;  %v1153_v10 = vrot.slane %v3617_v29, %v1152_v52 }
 0xb1a   :  { %v1111_v59 = vsel %vm41_vm0, %v3785_v57, 0.0 }
 0xb1b   :  { %1112 = vadd.xlane.f32.xlu1 %v1111_v59  ;;  %v1108_v61 = vsel %vm41_vm0, %v3788_v58, 0.0 }
 0xb1c   :  { %1109 = vadd.xlane.f32.xlu0 %v1108_v61 }
 0xba8   :  { %v1113_v62 = vpop.xlane.xlu1 %1112 }
 0xba9   :  { %v1115_v2 = vmul.f32 0.03125, %v1113_v62  ;;  %v1110_v3 = vpop.xlane.xlu0 %1109 }
 0xbaa   :  { %v1114_v4 = vmul.f32 0.03125, %v1110_v3 }
 0xbab   :  { %v1117_v5 = vsub.f32 %v3785_v57, %v1115_v2  ;;  %v1331_v2 = vsub.s32 7, %v3611_v26 }
 0xbac   :  { %v1116_v1 = vsub.f32 %v3788_v58, %v1114_v4 }
 0xbad   :  { %v1119_v7 = vmul.f32 %v1117_v5, %v1117_v5  ;;  %v1332_v3 = vrot.slane %v3617_v29, %v1331_v2 }
 0xbae   :  { %v1118_v6 = vmul.f32 %v1116_v1, %v1116_v1 }
 0xbaf   :  { %v1123_v8 = vsel %vm41_vm0, %v1119_v7, 0.0 }
 0xbb0   :  { %v1120_v0 = vsel %vm41_vm0, %v1118_v6, 0.0 }
 0xbb1   :  { %1121 = vadd.xlane.f32.xlu0 %v1120_v0 }
 0xbb5   :  { %1124 = vadd.xlane.f32.xlu0 %v1123_v8 }
 0xc3e   :  { %v1122_v27 = vpop.xlane.xlu0 %1121 }
 0xc3f   :  { %v1126_v31 = vmul.f32 0.03125, %v1122_v27 }
 0xc41   :  { %v1128_v13 = vadd.f32 1e-05, %v1126_v31 }
 0xc42   :  { %v1125_v32 = vpop.xlane.xlu0 %1124 }
 0xc43   :  { %3436 = vrsqrt.f32 %v1128_v13  ;;  %v1127_v33 = vmul.f32 0.03125, %v1125_v32 }
 0xc45   :  { %v1129_v34 = vadd.f32 1e-05, %v1127_v33 }
 0xc47   :  { %3438 = vrsqrt.f32 %v1129_v34  ;;  %v3883_v34 = vld [vmem:[%s4138_s7 + $0x8] sm:$0xff] }
 0xc4d   :  { %v3437_v37 = vpop.eup %3436 }
 0xc4e   :  { %v1132_v44 = vmul.f32 %v3437_v37, %v1116_v1 }
 0xc50   :  { %v1138_v39 = vmul.f32 %v1137_v46, %v1132_v44 }
 0xc51   :  { %v3439_v40 = vpop.eup %3438 }
 0xc52   :  { %v1133_v42 = vmul.f32 %v3439_v40, %v1117_v5  ;;  %v1144_v43 = vadd.f32 %v1143_v38, %v1138_v39 }
 0xc54   :  { %v1139_v45 = vmul.f32 %v1137_v46, %v1133_v42  ;;  %3012 = vmatprep.mubr.msk.f32.mxu1 %vm41_vm0, %v1144_v43  ;;  %v1366_v46 = vrot.slane %v3883_v34, %v71_v28  ;;  %v1383_v28 = vrot.slane %v3883_v34, %v87_v41 }
 0xc56   :  { %v1145_v48 = vadd.f32 %v1143_v38, %v1139_v45  ;;  %v1372_v38 = vrot.slane %v3883_v34, %v77_v30 }
 0xc58   :  { %3013 = vmatmul.mubr.msk.f32.vlgmr.msra.gmra.mrb[10].mxu1 %vm41_vm0, %v1145_v48 }
 0xc59   :  { %3225 = vmatpush3.bf16.msra.mxu1 %v3222_v21 }
 0xc5a   :  { %3227 = vmatprep.subr.bf16.mxu1 %v3226_v24 }
 0xc5d   :  { %3229 = vmatpush3.bf16.msra.mxu1 %v3226_v24 }
 0xd2b   :  { %v3014_v53 = vpop.f32.mrb[10].mxu1 }
 0xd2c   :  { %v1232_v55 = vadd.f32 %v3014_v53, %v1153_v10  ;;  %v1226_v56 = vpop.f32.mrb[11].mxu1 }
 0xd2d   :  { %v1227_v59 = vadd.f32 %v1226_v56, %v1153_v10 }
 0xd2e   :  { %v1236_v62 = vmax.f32 %v1232_v55, 0.0 }
 0xd2f   :  { %v1235_v61 = vmax.f32 %v1227_v59, 0.0 }
 0xd31   :  { %3031 = vmatprep.mubr.msk.f32.mxu0 %vm1245_vm5, %v1235_v61 }
 0xd32   :  { %3032 = vmatmul.mubr.msk.f32.vlgmr.msra.gmra.mrb[10].mxu0 %vm1245_vm5, %v1236_v62 }
 0xe05   :  { %v3033_v4 = vpop.f32.mrb[10].mxu0 }
 0xe06   :  { %v1328_v5 = vadd.f32 %v3033_v4, %v3785_v57  ;;  %v1318_v1 = vpop.f32.mrb[11].mxu0 }
 0xe07   :  { %v1327_v6 = vadd.f32 %v1318_v1, %v3788_v58 }
 0xe08   :  { %v3856_v0 = vadd.f32 %v1332_v3, %v1328_v5 }
 0xe09   :  { %v3858_v7 = vadd.f32 %v1332_v3, %v1327_v6 }
 0xe0a   :  { %v1340_v8 = vsel %vm41_vm0, %v3856_v0, 0.0 }
 0xe0b   :  { %1341 = vadd.xlane.f32.xlu1 %v1340_v8  ;;  %v1337_v9 = vsel %vm41_vm0, %v3858_v7, 0.0 }
 0xe0c   :  { %1338 = vadd.xlane.f32.xlu0 %v1337_v9 }
 0xe98   :  { %v1342_v14 = vpop.xlane.xlu1 %1341 }
 0xe99   :  { %v1344_v29 = vmul.f32 0.03125, %v1342_v14  ;;  %v1339_v15 = vpop.xlane.xlu0 %1338 }
 0xe9a   :  { %v1343_v16 = vmul.f32 0.03125, %v1339_v15 }
 0xe9b   :  { %v1346_v57 = vsub.f32 %v3856_v0, %v1344_v29 }
 0xe9c   :  { %v1345_v58 = vsub.f32 %v3858_v7, %v1343_v16 }
 0xe9d   :  { %v1348_v17 = vmul.f32 %v1346_v57, %v1346_v57 }
 0xe9e   :  { %v1347_v47 = vmul.f32 %v1345_v58, %v1345_v58 }
 0xe9f   :  { %v1352_v12 = vsel %vm41_vm0, %v1348_v17, 0.0 }
 0xea0   :  { %1353 = vadd.xlane.f32.xlu1 %v1352_v12  ;;  %v1349_v18 = vsel %vm41_vm0, %v1347_v47, 0.0 }
 0xea1   :  { %1350 = vadd.xlane.f32.xlu0 %v1349_v18 }
 0xf2d   :  { %v1354_v25 = vpop.xlane.xlu1 %1353 }
 0xf2e   :  { %v1356_v27 = vmul.f32 0.03125, %v1354_v25  ;;  %v1351_v31 = vpop.xlane.xlu0 %1350 }
 0xf2f   :  { %v1355_v13 = vmul.f32 0.03125, %v1351_v31 }
 0xf30   :  { %v1358_v32 = vadd.f32 1e-05, %v1356_v27 }
 0xf31   :  { %v1357_v33 = vadd.f32 1e-05, %v1355_v13 }
 0xf32   :  { %3440 = vrsqrt.f32 %v1358_v32 }
 0xf33   :  { %3442 = vrsqrt.f32 %v1357_v33 }
 0xf3c   :  { %v3441_v37 = vpop.eup %3440 }
 0xf3d   :  { %v3443_v44 = vpop.eup %3442  ;;  %v1362_v39 = vmul.f32 %v3441_v37, %v1346_v57 }
 0xf3e   :  { %v1361_v40 = vmul.f32 %v3443_v44, %v1345_v58 }
 0xf3f   :  { %v1368_v42 = vmul.f32 %v1366_v46, %v1362_v39 }
 0xf40   :  { %v1367_v43 = vmul.f32 %v1366_v46, %v1361_v40 }
 0xf41   :  { %v1374_v45 = vadd.f32 %v1372_v38, %v1368_v42 }
 0xf42   :  { %v1373_v48 = vadd.f32 %v1372_v38, %v1367_v43 }
 0xf44   :  { %3042 = vmatprep.mubr.msk.f32.mxu1 %vm41_vm0, %v1373_v48 }
 0xf45   :  { %3043 = vmatmul.mubr.msk.f32.vlgmr.msra.gmra.mrb[12].mxu1 %vm41_vm0, %v1374_v45 }
0x1018   :  { %v3044_v49 = vpop.f32.mrb[12].mxu1 }
0x1019   :  { %v3896_v50 = vadd.f32 %v3044_v49, %v1383_v28  ;;  %v1456_v51 = vpop.f32.mrb[13].mxu1 }
0x101a   :  { %v3898_v10 = vadd.f32 %v1456_v51, %v1383_v28 }
0x101c   :  { %3049 = vmatprep.mubr.msk.f32.mxu1 %vm176_vm1, %v3898_v10  ;;  %v3904_v30 = vpack.i.bf16 %v3896_v50, %v3898_v10 }
0x101e   :  { %3364 = vrot.lane.b32.xlu1 %v3904_v30, %s3510_s26  ;;  %3359 = vrot.lane.b32.xlu0 %v3904_v30, %s3511_s27 }
0x1022   :  { %1667 = vrot.lane.b32.xlu1 %v3898_v10, %s3512_s28 }
0x1026   :  { %1669 = vrot.lane.b32.xlu1 %v3896_v50, %s3512_s28  ;;  %s4151_s28 = smov 16  }
0x1090   :  { %v3365_v41 = vpop.permute.xlu1 %3364  ;;  %v3360_v53 = vpop.permute.xlu0 %3359 }
0x1091   :  { %v3367_v55 = vunpack.i.h.bf16 %v3365_v41  ;;  %v3366_v56 = vunpack.i.l.bf16 %v3365_v41  ;;  %v3362_v59 = vunpack.i.h.bf16 %v3360_v53  ;;  %v3361_v61 = vunpack.i.l.bf16 %v3360_v53 }
0x1093   :  { %v3230_v62 = vpack.c.bf16 %v3362_v59, %v3361_v61  ;;  %v3240_v3 = vpack.c.bf16 %v3367_v55, %v3366_v56 }
0x1094   :  { %v1668_v4 = vpop.permute.xlu1 %1667 }
0x1095   :  { %3232 = vmatprep.subr.msk.bf16.mxu1 %vm3652_vm2, %v3230_v62 }
0x1096   :  { %3235 = vmatpush3.bf16.xpose.msk.msra.mxu1 %vm3652_vm2, %v3230_v62 }
0x1097   :  { %3242 = vmatprep.subr.msk.bf16.mxu1 %vm3652_vm2, %v3240_v3 }
0x1098   :  { %v1670_v5 = vpop.permute.xlu1 %1669 }
0x109d   :  { %3050 = vmatmul.mubr.msk.f32.vlgmr.msra.gmra.mrb[14].mxu1 %vm176_vm1, %v3896_v50 }
0x109e   :  { %3245 = vmatpush3.bf16.xpose.msk.msra.mxu1 %vm3652_vm2, %v3240_v3  ;;  %3063 = vmatprep.mubr.msk.f32.mxu1 %vm176_vm1, %v1668_v4 }
0x10a5   :  { %3064 = vmatmul.mubr.msk.f32.vlgmr.msra.gmra.mrb[16].mxu1 %vm176_vm1, %v1670_v5 }
0x1170   :  { %v3051_v1 = vpop.f32.mrb[14].mxu1 }
0x1171   :  { %v1555_v6 = vmul.f32 0.35355338, %v3051_v1  ;;  %v1545_v8 = vpop.f32.mrb[15].mxu1 }
0x1172   :  { %v1554_v9 = vmul.f32 0.35355338, %v1545_v8 }
0x1173   :  { %v1557_v14 = vadd.f32 %v1555_v6, %v3671_v60 }
0x1174   :  { %v1556_v29 = vadd.f32 %v1554_v9, %v3676_v63 }
0x1175   :  { %v1561_v15 = vsel %vm264_vm3, %v1557_v14, -inf }
0x1176   :  { %1562 = vmax.xlane.f32.xlu1 %v1561_v15  ;;  %v1558_v16 = vsel %vm264_vm3, %v1556_v29, -inf }
0x1177   :  { %1559 = vmax.xlane.f32.xlu0 %v1558_v16 }
0x1178   :  { %v3065_v57 = vpop.f32.mrb[16].mxu1 }
0x1179   :  { %v1749_v58 = vpop.f32.mrb[17].mxu1  ;;  %v1759_v17 = vmul.f32 0.35355338, %v3065_v57 }
0x117a   :  { %v1758_v47 = vmul.f32 0.35355338, %v1749_v58 }
0x117b   :  { %v1761_v19 = vadd.f32 %v1759_v17, %v3671_v60 }
0x117c   :  { %v1760_v12 = vadd.f32 %v1758_v47, %v3676_v63 }
0x117d   :  { %v1765_v20 = vsel %vm264_vm3, %v1761_v19, -inf }
0x117e   :  { %v1762_v18 = vsel %vm264_vm3, %v1760_v12, -inf }
0x117f   :  { %1763 = vmax.xlane.f32.xlu0 %v1762_v18 }
0x1183   :  { %1766 = vmax.xlane.f32.xlu0 %v1765_v20 }
0x1203   :  { %v1563_v21 = vpop.xlane.xlu1 %1562 }
0x1204   :  { %v1565_v22 = vsub.f32 %v1557_v14, %v1563_v21  ;;  %v1560_v23 = vpop.xlane.xlu0 %1559 }
0x1205   :  { %v1564_v24 = vsub.f32 %v1556_v29, %v1560_v23 }
0x1206   :  { %v1568_v25 = vmul.f32 1.442695, %v1565_v22 }
0x1207   :  { %v1566_v27 = vmul.f32 1.442695, %v1564_v24  ;;  %v3484_v24 = vld [vmem:[%s4132_s1 + $0x8] sm:$0xff] }
0x1208   :  { %3444 = vpow2.f32 %v1568_v25 }
0x1209   :  { %3446 = vpow2.f32 %v1566_v27  ;;  %v3485_v27 = vld [vmem:[%s4132_s1] sm:$0xff]  ;;  %s4150_s1 = smov 8  }
0x120c   :  { %v1764_v31 = vpop.xlane.xlu0 %1763 }
0x120d   :  { %v1768_v13 = vsub.f32 %v1760_v12, %v1764_v31 }
0x120f   :  { %v1770_v32 = vmul.f32 1.442695, %v1768_v13 }
0x1210   :  { %v1767_v63 = vpop.xlane.xlu0 %1766 }
0x1211   :  { %3448 = vpow2.f32 %v1770_v32  ;;  %v1769_v33 = vsub.f32 %v1761_v19, %v1767_v63 }
0x1212   :  { %v3445_v46 = vpop.eup %3444 }
0x1213   :  { %v3447_v60 = vpop.eup %3446  ;;  %v1772_v37 = vmul.f32 1.442695, %v1769_v33  ;;  %v1573_v44 = vsel %vm264_vm3, %v3445_v46, 0.0 }
0x1214   :  { %1574 = vadd.xlane.f32.xlu1 %v1573_v44  ;;  %v1570_v38 = vsel %vm264_vm3, %v3447_v60, 0.0 }
0x1215   :  { %3450 = vpow2.f32 %v1772_v37  ;;  %1571 = vadd.xlane.f32.xlu0 %v1570_v38 }
0x121b   :  { %v3449_v39 = vpop.eup %3448 }
0x121c   :  { %v1774_v40 = vsel %vm264_vm3, %v3449_v39, 0.0 }
0x121d   :  { %1775 = vadd.xlane.f32.xlu0 %v1774_v40 }
0x121f   :  { %v3451_v42 = vpop.eup %3450 }
0x1220   :  { %v1777_v43 = vsel %vm264_vm3, %v3451_v42, 0.0 }
0x1221   :  { %1778 = vadd.xlane.f32.xlu1 %v1777_v43 }
0x1232   :  { %3374 = vrot.lane.b32.xlu1 %v3904_v30, %s3513_s13 }
0x1233   :  { %3369 = vrot.lane.b32.xlu0 %v3904_v30, %s3514_s14 }
0x1236   :  { %3379 = vrot.lane.b32.xlu1 %v3904_v30, %s3515_s15 }
0x1237   :  { %1873 = vrot.lane.b32.xlu0 %v3896_v50, %s3516_s16 }
0x123a   :  { %1871 = vrot.lane.b32.xlu1 %v3898_v10, %s3516_s16 }
0x12a1   :  { %v1575_v48 = vpop.xlane.xlu1 %1574 }
0x12a2   :  { %v1572_v45 = vpop.xlane.xlu0 %1571 }
0x12a3   :  { %3452 = vrcp.f32 %v1572_v45 }
0x12a4   :  { %3454 = vrcp.f32 %v1575_v48 }
0x12aa   :  { %v1776_v28 = vpop.xlane.xlu0 %1775 }
0x12ab   :  { %3456 = vrcp.f32 %v1776_v28 }
0x12ad   :  { %v3453_v49 = vpop.eup %3452 }
0x12ae   :  { %v1779_v51 = vpop.xlane.xlu1 %1778  ;;  %v3370_v41 = vpop.permute.xlu0 %3369  ;;  %v1577_v53 = vmul.f32 %v3453_v49, %v3447_v60 }
0x12af   :  { %3458 = vrcp.f32 %v1779_v51  ;;  %v3372_v55 = vunpack.i.h.bf16 %v3370_v41  ;;  %v3371_v56 = vunpack.i.l.bf16 %v3370_v41  ;;  %v3455_v61 = vpop.eup %3454 }
0x12b0   :  { %3056 = vmatprep.mubr.msk.f32.mxu0 %vm264_vm3, %v1577_v53  ;;  %v1579_v1 = vmul.f32 %v3455_v61, %v3445_v46 }
0x12b1   :  { %v3236_v59 = vpack.c.bf16 %v3372_v55, %v3371_v56 }
0x12b2   :  { %v3375_v62 = vpop.permute.xlu1 %3374  ;;  %v1874_v17 = vpop.permute.xlu0 %1873 }
0x12b3   :  { %v3377_v3 = vunpack.i.h.bf16 %v3375_v62  ;;  %v3376_v4 = vunpack.i.l.bf16 %v3375_v62  ;;  %3237 = vmatprep.subr.bf16.mxu0 %v3236_v59 }
0x12b4   :  { %3239 = vmatpush3.bf16.msra.mxu0 %v3236_v59 }
0x12b5   :  { %v3457_v5 = vpop.eup %3456  ;;  %v3246_v6 = vpack.c.bf16 %v3377_v3, %v3376_v4 }
0x12b6   :  { %v3380_v8 = vpop.permute.xlu1 %3379  ;;  %v1781_v9 = vmul.f32 %v3457_v5, %v3449_v39 }
0x12b7   :  { %v3382_v14 = vunpack.i.h.bf16 %v3380_v8  ;;  %v3381_v29 = vunpack.i.l.bf16 %v3380_v8  ;;  %3057 = vmatmul.mubr.msk.f32.vlgmr.msra.gmra.mrb[12].mxu0 %vm264_vm3, %v1579_v1  ;;  %3247 = vmatprep.subr.bf16.mxu0 %v3246_v6 }
0x12b8   :  { %3249 = vmatpush3.bf16.msra.mxu0 %v3246_v6  ;;  %3070 = vmatprep.mubr.msk.f32.mxu0 %vm264_vm3, %v1781_v9 }
0x12b9   :  { %v3459_v15 = vpop.eup %3458  ;;  %v3250_v16 = vpack.c.bf16 %v3382_v14, %v3381_v29 }
0x12ba   :  { %v1783_v57 = vmul.f32 %v3459_v15, %v3451_v42  ;;  %v1872_v58 = vpop.permute.xlu1 %1871 }
0x12bb   :  { %3252 = vmatprep.subr.msk.bf16.mxu0 %vm3652_vm2, %v3250_v16 }
0x12bc   :  { %3071 = vmatmul.mubr.msk.f32.vlgmr.msra.gmra.mrb[14].mxu0 %vm264_vm3, %v1783_v57 }
0x12bd   :  { %3077 = vmatprep.mubr.msk.f32.mxu0 %vm176_vm1, %v1872_v58 }
0x12c1   :  { %3255 = vmatpush3.bf16.xpose.msk.msra.mxu0 %vm3652_vm2, %v3250_v16 }
0x12c8   :  { %3078 = vmatmul.mubr.msk.f32.vlgmr.msra.gmra.mrb[16].mxu0 %vm176_vm1, %v1874_v17 }
0x138a   :  { %v3958_v47 = vpop.f32.mrb[12].mxu0 }
0x138b   :  { %v3960_v12 = vpop.f32.mrb[13].mxu0 }
0x138f   :  { %v3962_v18 = vpop.f32.mrb[14].mxu0 }
0x1390   :  { %v3964_v19 = vpop.f32.mrb[15].mxu0 }
0x139b   :  { %v3079_v20 = vpop.f32.mrb[16].mxu0 }
0x139c   :  { %v1963_v21 = vmul.f32 0.35355338, %v3079_v20  ;;  %v1953_v22 = vpop.f32.mrb[17].mxu0 }
0x139d   :  { %v1962_v23 = vmul.f32 0.35355338, %v1953_v22 }
0x139e   :  { %v1965_v25 = vadd.f32 %v3484_v24, %v1963_v21 }
0x139f   :  { %v1964_v31 = vadd.f32 %v3485_v27, %v1962_v23 }
0x13a0   :  { %v1969_v13 = vsel %vm264_vm3, %v1965_v25, -inf }
0x13a1   :  { %1970 = vmax.xlane.f32.xlu0 %v1969_v13  ;;  %v1966_v32 = vsel %vm264_vm3, %v1964_v31, -inf }
0x13a2   :  { %1967 = vmax.xlane.f32.xlu1 %v1966_v32 }
0x13b3   :  { %3384 = vrot.lane.b32.xlu1 %v3904_v30, %s3517_s0 }
0x13b7   :  { %2075 = vrot.lane.b32.xlu1 %v3898_v10, %s3518_s17 }
0x13bb   :  { %2077 = vrot.lane.b32.xlu1 %v3896_v50, %s3518_s17 }
0x142e   :  { %v1971_v63 = vpop.xlane.xlu0 %1970 }
0x142f   :  { %v1973_v33 = vsub.f32 %v1965_v25, %v1971_v63  ;;  %v1968_v46 = vpop.xlane.xlu1 %1967 }
0x1430   :  { %v1972_v60 = vsub.f32 %v1964_v31, %v1968_v46 }
0x1431   :  { %v1976_v37 = vmul.f32 1.442695, %v1973_v33 }
0x1432   :  { %v1974_v44 = vmul.f32 1.442695, %v1972_v60 }
0x1433   :  { %3460 = vpow2.f32 %v1976_v37  ;;  %v3385_v38 = vpop.permute.xlu1 %3384  ;;  %v2782_v37 = vld [vmem:[%s4135_s4 + $0x20] sm:$0xff] }
0x1434   :  { %v3387_v39 = vunpack.i.h.bf16 %v3385_v38  ;;  %v3386_v40 = vunpack.i.l.bf16 %v3385_v38  ;;  %3462 = vpow2.f32 %v1974_v44  ;;  %v2784_v44 = vld [vmem:[%s4135_s4 + $0x30] sm:$0xff] }
0x1436   :  { %v3256_v42 = vpack.c.bf16 %v3387_v39, %v3386_v40  ;;  %v2785_v39 = vld [vmem:[%s4135_s4 + $0x38] sm:$0xff] }
0x1437   :  { %v2076_v62 = vpop.permute.xlu1 %2075  ;;  %v3274_v40 = vpack.c.bf16 %v2785_v39, %v2784_v44  ;;  %v2430_v44 = vrot.slane %v3883_v34, %v1136_v35  ;;  %v2800_v35 = vld [vmem:[%s4137_s6 + $0x70] sm:$0xff] }
0x1438   :  { %3257 = vmatprep.subr.bf16.mxu1 %v3256_v42 }
0x1439   :  { %3259 = vmatpush3.bf16.msra.mxu1 %v3256_v42 }
0x143b   :  { %v2078_v3 = vpop.permute.xlu1 %2077 }
0x143d   :  { %v3461_v43 = vpop.eup %3460 }
0x143e   :  { %v1981_v10 = vsel %vm264_vm3, %v3461_v43, 0.0  ;;  %v3463_v45 = vpop.eup %3462 }
0x143f   :  { %1982 = vadd.xlane.f32.xlu0 %v1981_v10  ;;  %v1978_v50 = vsel %vm264_vm3, %v3463_v45, 0.0 }
0x1443   :  { %1979 = vadd.xlane.f32.xlu0 %v1978_v50 }
0x1459   :  { %3389 = vrot.lane.b32.xlu0 %v3904_v30, %s3519_s18 }
0x14cc   :  { %v1983_v48 = vpop.xlane.xlu0 %1982 }
0x14cd   :  { %3464 = vrcp.f32 %v1983_v48 }
0x14d0   :  { %v1980_v28 = vpop.xlane.xlu0 %1979 }
0x14d1   :  { %3466 = vrcp.f32 %v1980_v28 }
0x14d4   :  { %v3390_v49 = vpop.permute.xlu0 %3389 }
0x14d5   :  { %v3392_v51 = vunpack.i.h.bf16 %v3390_v49  ;;  %v3391_v41 = vunpack.i.l.bf16 %v3390_v49 }
0x14d7   :  { %v3260_v53 = vpack.c.bf16 %v3392_v51, %v3391_v41  ;;  %v3465_v55 = vpop.eup %3464 }
0x14d8   :  { %v1987_v61 = vmul.f32 %v3465_v55, %v3461_v43 }
0x14d9   :  { %3262 = vmatprep.subr.msk.bf16.mxu1 %vm3652_vm2, %v3260_v53 }
0x14db   :  { %v3467_v56 = vpop.eup %3466 }
0x14dc   :  { %v1985_v59 = vmul.f32 %v3467_v56, %v3463_v45 }
0x14de   :  { %3084 = vmatprep.mubr.msk.f32.mxu1 %vm264_vm3, %v1985_v59 }
0x14df   :  { %3085 = vmatmul.mubr.msk.f32.vlgmr.msra.gmra.mrb[18].mxu1 %vm264_vm3, %v1987_v61 }
0x14e0   :  { %3265 = vmatpush3.bf16.xpose.msk.msra.mxu1 %vm3652_vm2, %v3260_v53  ;;  %3091 = vmatprep.mubr.msk.f32.mxu1 %vm176_vm1, %v2076_v62 }
0x14e7   :  { %3092 = vmatmul.mubr.msk.f32.vlgmr.msra.gmra.mrb[20].mxu1 %vm176_vm1, %v2078_v3 }
0x15b2   :  { %v3086_v4 = vpop.f32.mrb[18].mxu1 }
0x15b3   :  { %v2066_v5 = vpop.f32.mrb[19].mxu1 }
0x15ba   :  { %v3093_v1 = vpop.f32.mrb[20].mxu1 }
0x15bb   :  { %v2167_v6 = vmul.f32 0.35355338, %v3093_v1  ;;  %v2157_v8 = vpop.f32.mrb[21].mxu1 }
0x15bc   :  { %v2166_v9 = vmul.f32 0.35355338, %v2157_v8 }
0x15bd   :  { %v2169_v14 = vadd.f32 %v3484_v24, %v2167_v6 }
0x15be   :  { %v2168_v29 = vadd.f32 %v3485_v27, %v2166_v9 }
0x15bf   :  { %v2173_v15 = vsel %vm264_vm3, %v2169_v14, -inf }
0x15c0   :  { %2174 = vmax.xlane.f32.xlu0 %v2173_v15  ;;  %v2170_v16 = vsel %vm264_vm3, %v2168_v29, -inf }
0x15c1   :  { %2171 = vmax.xlane.f32.xlu1 %v2170_v16 }
0x15d2   :  { %3394 = vrot.lane.b32.xlu1 %v3904_v30, %s3520_s19 }
0x15d6   :  { %2283 = vrot.lane.b32.xlu1 %v3962_v18, %s4150_s1 }
0x15da   :  { %2289 = vrot.lane.b32.xlu1 %v2066_v5, %s4151_s28 }
0x15de   :  { %2291 = vrot.lane.b32.xlu1 %v3086_v4, %s4151_s28 }
0x164d   :  { %v2175_v54 = vpop.xlane.xlu0 %2174 }
0x164e   :  { %v2177_v57 = vsub.f32 %v2169_v14, %v2175_v54  ;;  %v2172_v58 = vpop.xlane.xlu1 %2171 }
0x164f   :  { %v2176_v17 = vsub.f32 %v2168_v29, %v2172_v58  ;;  %v2789_v58 = vld [vmem:[%s4136_s5 + $0x28] sm:$0xff] }
0x1650   :  { %v2180_v20 = vmul.f32 1.442695, %v2177_v57  ;;  %v2788_v57 = vld [vmem:[%s4136_s5 + $0x20] sm:$0xff] }
0x1651   :  { %v2178_v21 = vmul.f32 1.442695, %v2176_v17  ;;  %v3278_v17 = vpack.c.bf16 %v2789_v58, %v2788_v57 }
0x1652   :  { %v3395_v22 = vpop.permute.xlu1 %3394 }
0x1653   :  { %3468 = vpow2.f32 %v2178_v21  ;;  %v3397_v23 = vunpack.i.h.bf16 %v3395_v22  ;;  %v3396_v24 = vunpack.i.l.bf16 %v3395_v22  ;;  %3279 = vmatprep.subr.bf16.mxu1 %v3278_v17  ;;  %v2791_v21 = vld [vmem:[%s4136_s5 + $0x38] sm:$0xff] }
0x1654   :  { %3470 = vpow2.f32 %v2180_v20  ;;  %3281 = vmatpush3.bf16.msra.mxu1 %v3278_v17  ;;  %v2790_v20 = vld [vmem:[%s4136_s5 + $0x30] sm:$0xff] }
0x1655   :  { %v3266_v25 = vpack.c.bf16 %v3397_v23, %v3396_v24  ;;  %v3282_v22 = vpack.c.bf16 %v2791_v21, %v2790_v20  ;;  %v2794_v23 = vld [vmem:[%s4137_s6 + $0x40] sm:$0xff]  ;;  %v2795_v24 = vld [vmem:[%s4137_s6 + $0x48] sm:$0xff] }
0x1656   :  { %v2284_v10 = vpop.permute.xlu1 %2283 }
0x1657   :  { %3267 = vmatprep.subr.bf16.mxu0 %v3266_v25  ;;  %v2304_v51 = vsel %vm176_vm1, %v3958_v47, %v2284_v10  ;;  %3283 = vmatprep.subr.bf16.mxu1 %v3282_v22 }
0x1658   :  { %3269 = vmatpush3.bf16.msra.mxu0 %v3266_v25  ;;  %3285 = vmatpush3.bf16.msra.mxu1 %v3282_v22  ;;  %v2796_v25 = vld [vmem:[%s4137_s6 + $0x50] sm:$0xff] }
0x165a   :  { %v2290_v45 = vpop.permute.xlu1 %2289 }
0x165d   :  { %v3469_v30 = vpop.eup %3468 }
0x165e   :  { %v2182_v18 = vsel %vm264_vm3, %v3469_v30, 0.0  ;;  %v3471_v27 = vpop.eup %3470  ;;  %v2292_v48 = vpop.permute.xlu1 %2291 }
0x165f   :  { %2183 = vadd.xlane.f32.xlu0 %v2182_v18  ;;  %v2185_v31 = vsel %vm264_vm3, %v3471_v27, 0.0  ;;  %v2306_v55 = vsel %vm264_vm3, %v2304_v51, %v2292_v48  ;;  %v2797_v18 = vld [vmem:[%s4137_s6 + $0x58] sm:$0xff] }
0x1663   :  { %2186 = vadd.xlane.f32.xlu0 %v2185_v31  ;;  %v2798_v31 = vld [vmem:[%s4137_s6 + $0x60] sm:$0xff] }
0x1679   :  { %2281 = vrot.lane.b32.xlu0 %v3964_v19, %s4150_s1  ;;  %v2783_v19 = vld [vmem:[%s4135_s4 + $0x28] sm:$0xff] }
0x167a   :  { %v3270_v38 = vpack.c.bf16 %v2783_v19, %v2782_v37 }
0x167c   :  { %3271 = vmatprep.subr.bf16.mxu0 %v3270_v38 }
0x16ec   :  { %v2184_v13 = vpop.xlane.xlu0 %2183 }
0x16ed   :  { %3472 = vrcp.f32 %v2184_v13  ;;  %v2799_v13 = vld [vmem:[%s4137_s6 + $0x68] sm:$0xff] }
0x16f0   :  { %v2187_v32 = vpop.xlane.xlu0 %2186 }
0x16f1   :  { %3474 = vrcp.f32 %v2187_v32  ;;  %v3294_v32 = vpack.c.bf16 %v2799_v13, %v2798_v31 }
0x16f4   :  { %v2282_v50 = vpop.permute.xlu0 %2281 }
0x16f5   :  { %v2303_v28 = vsel %vm176_vm1, %v3960_v12, %v2282_v50  ;;  %v2317_v12 = vrot.slane %v3883_v34, %v1023_v11 }
0x16f6   :  { %v2305_v41 = vsel %vm264_vm3, %v2303_v28, %v2290_v45  ;;  %v2801_v28 = vld [vmem:[%s4137_s6 + $0x78] sm:$0xff] }
0x16f7   :  { %v3473_v63 = vpop.eup %3472 }
0x16f8   :  { %v2189_v33 = vmul.f32 %v3473_v63, %v3469_v30  ;;  %v3286_v30 = vpack.c.bf16 %v2795_v24, %v2794_v23  ;;  %v2804_v23 = vld [vmem:[%s4139_s8] ss:$0 sm:$0xff] }
0x16fa   :  { %3098 = vmatprep.mubr.msk.f32.mxu0 %vm264_vm3, %v2189_v33 }
0x16fb   :  { %v3475_v46 = vpop.eup %3474 }
0x16fc   :  { %v2191_v60 = vmul.f32 %v3475_v46, %v3471_v27  ;;  %v3290_v27 = vpack.c.bf16 %v2797_v18, %v2796_v25 }
0x16fe   :  { %3099 = vmatmul.mubr.msk.f32.vlgmr.msra.gmra.mrb[18].mxu0 %vm264_vm3, %v2191_v60 }
0x16ff   :  { %3273 = vmatpush3.bf16.msra.mxu0 %v3270_v38 }
0x1700   :  { %3275 = vmatprep.subr.bf16.mxu0 %v3274_v40 }
0x1703   :  { %3277 = vmatpush3.bf16.msra.mxu0 %v3274_v40  ;;  %v2436_v40 = vrot.slane %v3883_v34, %v1142_v36  ;;  %v2447_v36 = vrot.slane %v3883_v34, %v1152_v52 }
0x1704   :  { %3287 = vmatprep.subr.bf16.mxu0 %v3286_v30 }
0x17d1   :  { %v3100_v42 = vpop.f32.mrb[18].mxu0 }
0x17d2   :  { %2299 = vrot.lane.b32.xlu1 %v3100_v42, %s4152_s30  ;;  %v2270_v43 = vpop.f32.mrb[19].mxu0 }
0x17d3   :  { %2297 = vrot.lane.b32.xlu0 %v2270_v43, %s4152_s30 }
0x1844   :  { %v2300_v49 = vpop.permute.xlu1 %2299 }
0x1845   :  { %v2298_v53 = vpop.permute.xlu0 %2297  ;;  %v2308_v59 = vsel %vm1014_vm4, %v2306_v55, %v2300_v49  ;;  %v3298_v49 = vpack.c.bf16 %v2801_v28, %v2800_v35 }
0x1846   :  { %v2307_v56 = vsel %vm1014_vm4, %v2305_v41, %v2298_v53 }
0x1847   :  { %3109 = vmatprep.mubr.msk.f32.mxu0 %vm41_vm0, %v2307_v56 }
0x1848   :  { %3110 = vmatmul.mubr.msk.f32.vlgmr.msra.gmra.mrb[20].mxu0 %vm41_vm0, %v2308_v59 }
0x1849   :  { %3289 = vmatpush3.bf16.msra.mxu0 %v3286_v30  ;;  %v2805_v30 = vld [vmem:[%s4140_s9] ss:$0 sm:$0xff] }
0x184a   :  { %3291 = vmatprep.subr.bf16.mxu0 %v3290_v27 }
0x184d   :  { %3293 = vmatpush3.bf16.msra.mxu0 %v3290_v27 }
0x184e   :  { %3295 = vmatprep.subr.bf16.mxu0 %v3294_v32 }
0x1851   :  { %3297 = vmatpush3.bf16.msra.mxu0 %v3294_v32 }
0x1852   :  { %3299 = vmatprep.subr.bf16.mxu0 %v3298_v49 }
0x1855   :  { %3301 = vmatpush3.bf16.msra.mxu0 %v3298_v49 }
0x191b   :  { %v3111_v61 = vpop.f32.mrb[20].mxu0 }
0x191c   :  { %v2396_v62 = vadd.f32 %v3111_v61, %v2317_v12  ;;  %v2390_v47 = vpop.f32.mrb[21].mxu0 }
0x191d   :  { %v2391_v3 = vadd.f32 %v2390_v47, %v2317_v12  ;;  %v2626_v12 = vrot.slane %v3883_v34, %v1331_v2 }
0x191e   :  { %v4034_v4 = vadd.f32 %v2396_v62, %v3856_v0 }
0x191f   :  { %v4037_v5 = vadd.f32 %v2391_v3, %v3858_v7 }
0x1920   :  { %v2404_v1 = vsel %vm41_vm0, %v4034_v4, 0.0 }
0x1921   :  { %2405 = vadd.xlane.f32.xlu1 %v2404_v1  ;;  %v2401_v6 = vsel %vm41_vm0, %v4037_v5, 0.0 }
0x1922   :  { %2402 = vadd.xlane.f32.xlu0 %v2401_v6 }
0x19ae   :  { %v2406_v8 = vpop.xlane.xlu1 %2405 }
0x19af   :  { %v2408_v11 = vmul.f32 0.03125, %v2406_v8  ;;  %v2403_v9 = vpop.xlane.xlu0 %2402 }
0x19b0   :  { %v2407_v14 = vmul.f32 0.03125, %v2403_v9 }
0x19b1   :  { %v2410_v29 = vsub.f32 %v4034_v4, %v2408_v11  ;;  %v3524_v11 = vmov 0  }
0x19b2   :  { %v2409_v0 = vsub.f32 %v4037_v5, %v2407_v14  ;;  %3399 = vset.pattern.permute.xlu1 %v3524_v11  ;;  %3398 = vset.pattern.permute.xlu0 %v3524_v11 }
0x19b3   :  { %v2412_v16 = vmul.f32 %v2410_v29, %v2410_v29 }
0x19b4   :  { %v2411_v15 = vmul.f32 %v2409_v0, %v2409_v0 }
0x19b5   :  { %v2416_v54 = vsel %vm41_vm0, %v2412_v16, 0.0  ;;  %v2673_v16 = vld [vmem:[%s4133_s2] sm:$0xff] }
0x19b6   :  { %v2413_v7 = vsel %vm41_vm0, %v2411_v15, 0.0 }
0x19b7   :  { %2414 = vadd.xlane.f32.xlu0 %v2413_v7  ;;  %v2674_v7 = vld [vmem:[%s4133_s2 + $0x8] sm:$0xff]  ;;  %s3525_s2 = smov [#allocation2]  }
0x19b8   :  { %s2711_s8 = sshll.u32 %s3525_s2, 4  ;;  %s2712_s8 = int_to_ptr.vmem [resolvable:$true] %s2711_s8 }
0x19b9   :  { %s3486_s9 = scalar_lea.vmem %s2712_s8, 32  ;;  %p3491_p1 = scmp.lt.s32.totalorder %s2712_s8, %s2712_s8 }
0x19ba   :  { %p3487_p0 = scmp.ne.s32.totalorder %s2712_s8, %s3486_s9  ;;  %p3492_p2 = scmp.lt.s32.totalorder %s3486_s9, %s3486_s9 }
0x19bb   :  { %2417 = vadd.xlane.f32.xlu0 %v2416_v54 }
0x19bc   :  { %p3493_p3 = por %p3492_p2, %p3491_p1 }
0x19be   :  { %p3494_p4 = pnand %p3493_p3, %p3487_p0 }
0x1a44   :  { %v2415_v63 = vpop.xlane.xlu0 %2414 }
0x1a45   :  { %v2419_v33 = vmul.f32 0.03125, %v2415_v63 }
0x1a47   :  { %v2421_v46 = vadd.f32 1e-05, %v2419_v33 }
0x1a48   :  { %v2418_v60 = vpop.xlane.xlu0 %2417 }
0x1a49   :  { %3476 = vrsqrt.f32 %v2421_v46  ;;  %v2420_v37 = vmul.f32 0.03125, %v2418_v60 }
0x1a4b   :  { %v2422_v19 = vadd.f32 1e-05, %v2420_v37 }
0x1a4d   :  { %3478 = vrsqrt.f32 %v2422_v19 }
0x1a53   :  { %v3477_v38 = vpop.eup %3476 }
0x1a54   :  { %v2425_v39 = vmul.f32 %v3477_v38, %v2409_v0 }
0x1a56   :  { %v2431_v42 = vmul.f32 %v2430_v44, %v2425_v39 }
0x1a57   :  { %v3479_v43 = vpop.eup %3478 }
0x1a58   :  { %v2426_v10 = vmul.f32 %v3479_v43, %v2410_v29  ;;  %v2437_v45 = vadd.f32 %v2436_v40, %v2431_v42 }
0x1a5a   :  { %v2432_v50 = vmul.f32 %v2430_v44, %v2426_v10  ;;  %3120 = vmatprep.mubr.msk.f32.mxu1 %vm41_vm0, %v2437_v45 }
0x1a5c   :  { %v2438_v48 = vadd.f32 %v2436_v40, %v2432_v50 }
0x1a5e   :  { %3121 = vmatmul.mubr.msk.f32.vlgmr.msra.gmra.mrb[22].mxu1 %vm41_vm0, %v2438_v48 }
0x1b31   :  { %v3122_v51 = vpop.f32.mrb[22].mxu1 }
0x1b32   :  { %v2526_v41 = vadd.f32 %v3122_v51, %v2447_v36  ;;  %v2520_v53 = vpop.f32.mrb[23].mxu1 }
0x1b33   :  { %v2521_v55 = vadd.f32 %v2520_v53, %v2447_v36 }
0x1b34   :  { %v2530_v59 = vmax.f32 %v2526_v41, 0.0 }
0x1b35   :  { %v2529_v56 = vmax.f32 %v2521_v55, 0.0 }
0x1b37   :  { %3139 = vmatprep.mubr.msk.f32.mxu0 %vm1245_vm5, %v2529_v56 }
0x1b38   :  { %3140 = vmatmul.mubr.msk.f32.vlgmr.msra.gmra.mrb[22].mxu0 %vm1245_vm5, %v2530_v59 }
0x1c0b   :  { %v3141_v61 = vpop.f32.mrb[22].mxu0 }
0x1c0c   :  { %v2622_v62 = vadd.f32 %v3141_v61, %v4034_v4  ;;  %v2612_v47 = vpop.f32.mrb[23].mxu0 }
0x1c0d   :  { %v2621_v52 = vadd.f32 %v2612_v47, %v4037_v5 }
0x1c0e   :  { %v2628_v3 = vadd.f32 %v2626_v12, %v2622_v62 }
0x1c0f   :  { %v2627_v1 = vadd.f32 %v2626_v12, %v2621_v52 }
0x1c10   :  { %v2634_v6 = vsel %vm41_vm0, %v2628_v3, 0.0 }
0x1c11   :  { %2635 = vadd.xlane.f32.xlu1 %v2634_v6  ;;  %v2631_v8 = vsel %vm41_vm0, %v2627_v1, 0.0 }
0x1c12   :  { %2632 = vadd.xlane.f32.xlu0 %v2631_v8 }
0x1c9e   :  { %v2636_v26 = vpop.xlane.xlu1 %2635 }
0x1c9f   :  { %v2638_v9 = vmul.f32 0.03125, %v2636_v26  ;;  %v2633_v2 = vpop.xlane.xlu0 %2632 }
0x1ca0   :  { %v2637_v34 = vmul.f32 0.03125, %v2633_v2 }
0x1ca1   :  { %v2640_v14 = vsub.f32 %v2628_v3, %v2638_v9 }
0x1ca2   :  { %v2639_v4 = vsub.f32 %v2627_v1, %v2637_v34 }
0x1ca3   :  { %v2642_v29 = vmul.f32 %v2640_v14, %v2640_v14 }
0x1ca4   :  { %v2641_v0 = vmul.f32 %v2639_v4, %v2639_v4 }
0x1ca5   :  { %v2646_v5 = vsel %vm41_vm0, %v2642_v29, 0.0 }
0x1ca6   :  { %2647 = vadd.xlane.f32.xlu1 %v2646_v5  ;;  %v2643_v15 = vsel %vm41_vm0, %v2641_v0, 0.0 }
0x1ca7   :  { %2644 = vadd.xlane.f32.xlu0 %v2643_v15 }
0x1cb7   :  { %2682 = vperm.xlu1 %3399, %v2674_v7  }
0x1cbd   :  { %2677 = vperm.xlu0 %3398, %v2673_v16  }
0x1d33   :  { %v2648_v54 = vpop.xlane.xlu1 %2647 }
0x1d34   :  { %v2650_v57 = vmul.f32 0.03125, %v2648_v54  ;;  %v2645_v58 = vpop.xlane.xlu0 %2644 }
0x1d35   :  { %v2649_v17 = vmul.f32 0.03125, %v2645_v58 }
0x1d36   :  { %v2652_v20 = vadd.f32 1e-05, %v2650_v57 }
0x1d37   :  { %v2651_v21 = vadd.f32 1e-05, %v2649_v17  ;;  %v2683_v31 = vpop.permute.xlu1 %2682 }
0x1d38   :  { %3480 = vrsqrt.f32 %v2652_v20 }
0x1d39   :  { %3482 = vrsqrt.f32 %v2651_v21 }
0x1d3c   :  { %v2678_v63 = vpop.permute.xlu0 %2677 }
0x1d42   :  { %v3481_v22 = vpop.eup %3480 }
0x1d43   :  { %v3483_v24 = vpop.eup %3482  ;;  %v2656_v25 = vmul.f32 %v3481_v22, %v2640_v14 }
0x1d44   :  { %v2655_v18 = vmul.f32 %v3483_v24, %v2639_v4 }
0x1d45   :  { %v2664_v27 = vmul.f32 %v2804_v23, %v2656_v25 }
0x1d46   :  { %v2663_v13 = vmul.f32 %v2804_v23, %v2655_v18 }
0x1d47   :  { %v2672_v32 = vadd.f32 %v2805_v30, %v2664_v27 }
0x1d48   :  { %v2671_v33 = vadd.f32 %v2805_v30, %v2663_v13 }
0x1d49   :  { %v2686_v46 = vmul.f32 %v2683_v31, %v2672_v32 }
0x1d4a   :  { %v2685_v60 = vmul.f32 %v2678_v63, %v2671_v33 }
0x1d4b   :  { %v2694_v37 = vsel %vm41_vm0, %v2686_v46, 0.0 }
0x1d4c   :  { %v2695_v19 = vrot.slane %v2694_v37, 4  ;;  %v2687_v44 = vsel %vm41_vm0, %v2685_v60, 0.0 }
0x1d4d   :  { %v2688_v38 = vrot.slane %v2687_v44, 4 }
0x1d4e   :  { %v2696_v39 = vadd.f32 %v2695_v19, %v2694_v37 }
0x1d4f   :  { %v2689_v40 = vadd.f32 %v2688_v38, %v2687_v44 }
0x1d50   :  { %v2697_v42 = vrot.slane %v2696_v39, 2 }
0x1d51   :  { %v2690_v43 = vrot.slane %v2689_v40, 2 }
0x1d52   :  { %v2698_v10 = vadd.f32 %v2697_v42, %v2696_v39 }
0x1d53   :  { %v2691_v45 = vadd.f32 %v2690_v43, %v2689_v40 }
0x1d54   :  { %v2699_v50 = vrot.slane %v2698_v10, 1 }
0x1d55   :  { %v2692_v48 = vrot.slane %v2691_v45, 1 }
0x1d56   :  { %v2700_v35 = vadd.f32 %v2699_v50, %v2698_v10 }
0x1d57   :  { %v2693_v28 = vadd.f32 %v2692_v48, %v2691_v45 }
0x1d59   :  { %v2702_v49 = vsel %vm2701_vm6, %v2693_v28, %v2700_v35 }
0x1d5a   :  { %2704 = vst.msk [vmem:[#allocation2] sm:$0x3] %vm2703_vm7, %v2702_v49 }
0x1d5b   :  { %3497 = shalt.err (!%p3494_p4)
}
0x1d5c   :  { %s3498_s21 = scalar_lea.hbm %s4141_s10, 32 }
0x1d5d   :  { %p3499_p5 = scmp.ne.s32.totalorder %s4141_s10, %s3498_s21  ;;  %p3502_p6 = scmp.lt.u32.totalorder %s3498_s21, %s4141_s10 }
0x1d5f   :  { %p3504_p7 = pnand %p3502_p6, %p3499_p5 }
0x1d61   :  { %3507 = shalt.err (!%p3504_p7)
}
0x1d62   :  { %2714 = dma.vmem_to_hbm [thread:$0]  %s2712_s8, 32, %s4141_s10, [#allocation3]  }
0x1d63   :  { %3508 = dma.done.wait [#allocation3], 32  }
0x1d64   :  { %3509 = vsyncadd [#allocation3], 4294967264 }
0x1d65   :  { %2718 = vsyncpa [#allocation3], 1 }

</bundles_post_ra>
